<compile_context>
chip_gen: v6e
topology: v6e:2x2x1
jax: 0.10.0
libtpu: 0.0.40
codegen_flags: <defaults>
</compile_context>

<pallas_src>
import functools

import jax
import jax.numpy as jnp
from jax import lax
from jax.experimental import pallas as pl
from jax.experimental.pallas import tpu as pltpu

IN_BANDS = 6        # bands per temporal image (input has 2 * IN_BANDS channels)
HIDDEN = 32         # siamese encoder width
N_CLASSES = 2       # change / no-change
CHUNK = 1024        # lanes per inner-loop step (intermediates stay in vregs)
MAX_TILE_N = 16384  # pixels per grid step; ~900 KiB/step >> 0.35 us step overhead


def _dual_input_kernel(x_ref, w1t_ref, b1_ref, w2t_ref, b2_ref, o_ref,
                       *, chunk, n_chunks):
    """One (batch, pixel-tile) grid step; inner loop over lane chunks.

    x_ref  : (1, 2*IN_BANDS, tile_n)  NCHW tile, pixels on the lane axis
    w1t_ref: (2*HIDDEN, 2*IN_BANDS)   block-diagonal shared encoder weight (T)
    b1_ref : (2*HIDDEN, 1)
    w2t_ref: (N_CLASSES, HIDDEN)      classifier weight (transposed)
    b2_ref : (N_CLASSES, 1)
    o_ref  : (1, N_CLASSES, tile_n)
    """
    # Weights stay VMEM-resident; load them to vregs once per grid step.
    w1t = w1t_ref[...]
    b1 = b1_ref[...]
    w2t = w2t_ref[...]
    b2 = b2_ref[...]

    def body(c, carry):
        off = pl.multiple_of(c * chunk, chunk)                      # 128-aligned
        x = x_ref[0, :, pl.ds(off, chunk)]                          # (12, chunk)
        # Both siamese branches in ONE MXU pass via the block-diagonal weight.
        f = jnp.dot(w1t, x, preferred_element_type=jnp.float32)     # (64, chunk)
        f = jnp.maximum(f + b1, 0.0)
        # Bitemporal feature difference (split is sublane-aligned: 32 % 8 == 0).
        d = jnp.abs(f[:HIDDEN, :] - f[HIDDEN:, :])                  # (32, chunk)
        # 1x1-conv classifier -> lane-dense (N_CLASSES, chunk) store.
        out = jnp.dot(w2t, d, preferred_element_type=jnp.float32) + b2
        o_ref[0, :, pl.ds(off, chunk)] = out.astype(o_ref.dtype)
        return carry

    lax.fori_loop(0, n_chunks, body, None, unroll=True)


def _choose_tiling(hw, batch):
    """Return (tile_n, n_tiles, hw_pad).

    Pick the tile size first, then pad H*W up to tile_n * n_tiles (no divisor
    search -> never degrades to 128-wide tiles).  Small images run as a single
    full-image tile.  Guarantees batch * n_tiles >= 2 whenever the image has
    more than 128 pixels so both v7x TensorCores get work.
    """
    hw128 = -(-hw // 128) * 128
    if hw128 <= CHUNK:
        # Small image: one sub-chunk tile (two for single-image batches).
        n_tiles = 2 if (batch < 2 and hw128 > 128) else 1
        tile_n = -(-(hw128 // 128) // n_tiles) * 128
    else:
        n_chunks_total = -(-hw // CHUNK)
        n_tiles = -(-n_chunks_total // (MAX_TILE_N // CHUNK))
        if batch * n_tiles < 2 and n_chunks_total >= 2:
            n_tiles = 2
        tile_n = -(-n_chunks_total // n_tiles) * CHUNK
    return tile_n, n_tiles, tile_n * n_tiles


def dual_input_forward(x, params):
    """DualInputWrapper.forward: x [B, 2*IN_BANDS, H, W] -> logits [B, N_CLASSES, H, W]."""
    w1, b1, w2, b2 = params
    B, C, H, W = x.shape
    assert C == 2 * IN_BANDS

    # The x[:, :6] / x[:, 6:] channel split of DualInputWrapper is folded into
    # a block-diagonal encoder weight so the 12-channel input is read once.
    w1t = w1.T                                                   # (HIDDEN, IN_BANDS)
    w1t_bd = jnp.zeros((2 * HIDDEN, 2 * IN_BANDS), jnp.float32)
    w1t_bd = w1t_bd.at[:HIDDEN, :IN_BANDS].set(w1t)
    w1t_bd = w1t_bd.at[HIDDEN:, IN_BANDS:].set(w1t)
    b1_col = jnp.concatenate([b1, b1]).reshape(2 * HIDDEN, 1)
    w2t = w2.T                                                   # (N_CLASSES, HIDDEN)
    b2_col = b2.reshape(N_CLASSES, 1)

    hw = H * W
    tile_n, n_tiles, hw_pad = _choose_tiling(hw, B)
    chunk = min(CHUNK, tile_n)
    n_chunks = tile_n // chunk          # <= 16 by construction

    x_flat = x.reshape(B, C, hw)        # free: NCHW is contiguous
    if hw_pad != hw:
        # Zero-padded pixels produce b2-only logits that are sliced off below.
        x_flat = jnp.pad(x_flat, ((0, 0), (0, 0), (0, hw_pad - hw)))

    n_pix = B * hw_pad
    cost = pl.CostEstimate(
        flops=n_pix * (2 * (2 * IN_BANDS) * (2 * HIDDEN)      # encoder matmul
                       + 2 * HIDDEN * N_CLASSES               # classifier matmul
                       + 6 * HIDDEN + N_CLASSES),             # bias/relu/|diff|/bias
        transcendentals=0,
        bytes_accessed=n_pix * 4 * (2 * IN_BANDS + N_CLASSES),
    )

    kernel = functools.partial(_dual_input_kernel, chunk=chunk, n_chunks=n_chunks)

    out_flat = pl.pallas_call(
        kernel,
        out_shape=jax.ShapeDtypeStruct((B, N_CLASSES, hw_pad), jnp.float32),
        grid_spec=pltpu.PrefetchScalarGridSpec(
            num_scalar_prefetch=0,
            grid=(B, n_tiles),
            in_specs=[
                pl.BlockSpec((1, 2 * IN_BANDS, tile_n), lambda b, i: (b, 0, i)),   # x tile
                pl.BlockSpec((2 * HIDDEN, 2 * IN_BANDS), lambda b, i: (0, 0)),     # W1 (block-diag, T)
                pl.BlockSpec((2 * HIDDEN, 1), lambda b, i: (0, 0)),                # b1
                pl.BlockSpec((N_CLASSES, HIDDEN), lambda b, i: (0, 0)),            # W2^T
                pl.BlockSpec((N_CLASSES, 1), lambda b, i: (0, 0)),                 # b2
            ],
            out_specs=pl.BlockSpec((1, N_CLASSES, tile_n), lambda b, i: (b, 0, i)),
        ),
        compiler_params=pltpu.CompilerParams(
            dimension_semantics=("parallel", "parallel")),
        cost_estimate=cost,
    )(x_flat, w1t_bd, b1_col, w2t, b2_col)

    if hw_pad != hw:
        out_flat = out_flat[:, :, :hw]
    return out_flat.reshape(B, N_CLASSES, H, W)


def init_params(key):
    k1, k2, k3, k4 = jax.random.split(key, 4)
    w1 = jax.random.normal(k1, (IN_BANDS, HIDDEN), jnp.float32) * 0.1
    b1 = jax.random.normal(k2, (HIDDEN,), jnp.float32) * 0.01
    w2 = jax.random.normal(k3, (HIDDEN, N_CLASSES), jnp.float32) * 0.1
    b2 = jax.random.normal(k4, (N_CLASSES,), jnp.float32) * 0.01
    return w1, b1, w2, b2


def reference_forward(x, params):
    """Pure-JAX reference of the same siamese head (canonical NHWC math)."""
    w1, b1, w2, b2 = params
    B, C, H, W = x.shape
    x1 = jnp.transpose(x[:, :IN_BANDS], (0, 2, 3, 1)).reshape(-1, IN_BANDS)
    x2 = jnp.transpose(x[:, IN_BANDS:], (0, 2, 3, 1)).reshape(-1, IN_BANDS)
    f1 = jnp.maximum(x1 @ w1 + b1, 0.0)
    f2 = jnp.maximum(x2 @ w1 + b1, 0.0)
    out = (jnp.abs(f1 - f2) @ w2 + b2).reshape(B, H, W, N_CLASSES)
    return jnp.transpose(out, (0, 3, 1, 2))


if __name__ == "__main__":
    key = jax.random.PRNGKey(0)
    kx1, kx2, kx3, kp = jax.random.split(key, 4)
    params = init_params(kp)

    # Case 1: pixel count is an exact chunk multiple (single 4096-pixel tile,
    #         grid (2, 1) -> both v7x TCs busy).
    # Case 2: ragged pixel count exercising the zero-pad + slice path.
    # Case 3: single-image batch exercising the >=2-grid-step split and the
    #         multi-chunk inner loop path.
    cases = (((2, 64, 64), kx1), ((2, 30, 30), kx2), ((1, 40, 40), kx3))
    for (B, H, W), kx in cases:
        x = jax.random.normal(kx, (B, 2 * IN_BANDS, H, W), jnp.float32)
        out = dual_input_forward(x, params)
        jax.block_until_ready(out)
        ref = reference_forward(x, params)
        assert out.shape == (B, N_CLASSES, H, W)
        assert jnp.allclose(out, ref, atol=1e-4, rtol=1e-4), (B, H, W)

    print("KERNEL_OK")
</pallas_src>

<mosaic_0001>
module attributes {stable_mosaic.version = 11 : i64} {
  func.func @_dual_input_kernel(%arg0: i32, %arg1: i32, %arg2: memref<1x12x4096xf32, #tpu.memory_space<vmem>>, %arg3: memref<64x12xf32, #tpu.memory_space<vmem>>, %arg4: memref<64x1xf32, #tpu.memory_space<vmem>>, %arg5: memref<2x32xf32, #tpu.memory_space<vmem>>, %arg6: memref<2x1xf32, #tpu.memory_space<vmem>>, %arg7: memref<1x2x4096xf32, #tpu.memory_space<vmem>>) attributes {dimension_semantics = [#tpu.dimension_semantics<parallel>, #tpu.dimension_semantics<parallel>], iteration_bounds = array<i64: 2, 1>, scalar_prefetch = 0 : i64, scratch_operands = 0 : i64, tpu.core_type = #tpu.core_type<tc>, window_params = [{transform_indices = @transform_0, window_bounds = array<i64: 1, 12, 4096>}, {pipeline_mode = #tpu.pipeline_mode<synchronous>, transform_indices = @transform_1, window_bounds = array<i64: 64, 12>}, {pipeline_mode = #tpu.pipeline_mode<synchronous>, transform_indices = @transform_2, window_bounds = array<i64: 64, 1>}, {pipeline_mode = #tpu.pipeline_mode<synchronous>, transform_indices = @transform_3, window_bounds = array<i64: 2, 32>}, {pipeline_mode = #tpu.pipeline_mode<synchronous>, transform_indices = @transform_4, window_bounds = array<i64: 2, 1>}, {transform_indices = @transform_5, window_bounds = array<i64: 1, 2, 4096>}]} {
    %c0 = arith.constant 0 : index
    %c0_0 = arith.constant 0 : index
    %0 = vector.load %arg3[%c0, %c0_0] : memref<64x12xf32, #tpu.memory_space<vmem>>, vector<64x12xf32>
    %c0_1 = arith.constant 0 : index
    %c0_2 = arith.constant 0 : index
    %1 = vector.load %arg4[%c0_1, %c0_2] : memref<64x1xf32, #tpu.memory_space<vmem>>, vector<64x1xf32>
    %c0_3 = arith.constant 0 : index
    %c0_4 = arith.constant 0 : index
    %2 = vector.load %arg5[%c0_3, %c0_4] : memref<2x32xf32, #tpu.memory_space<vmem>>, vector<2x32xf32>
    %c0_5 = arith.constant 0 : index
    %c0_6 = arith.constant 0 : index
    %3 = vector.load %arg6[%c0_5, %c0_6] : memref<2x1xf32, #tpu.memory_space<vmem>>, vector<2x1xf32>
    %c0_i32 = arith.constant 0 : i32
    %c1024_i32 = arith.constant 1024 : i32
    %4 = arith.muli %c0_i32, %c1024_i32 : i32
    %5 = tpu.assume_multiple %4, 1024 : i32
    %c0_7 = arith.constant 0 : index
    %c0_8 = arith.constant 0 : index
    %6 = arith.index_cast %5 : i32 to index
    %7 = vector.load %arg2[%c0_7, %c0_8, %6] : memref<1x12x4096xf32, #tpu.memory_space<vmem>>, vector<1x12x1024xf32>
    %8 = vector.shape_cast %7 : vector<1x12x1024xf32> to vector<12x1024xf32>
    %cst = arith.constant dense<0.000000e+00> : vector<64x1024xf32>
    %9 = tpu.matmul %0, %8, %cst {dimension_numbers = #tpu.dot_dimension_numbers<[1], [0], [0], [1], [0, 0, 1, 1], [], []>} : vector<64x12xf32>, vector<12x1024xf32>, vector<64x1024xf32> -> vector<64x1024xf32>
    %10 = vector.broadcast %1 : vector<64x1xf32> to vector<64x1024xf32>
    %11 = arith.addf %9, %10 : vector<64x1024xf32>
    %cst_9 = arith.constant 0.000000e+00 : f32
    %12 = vector.broadcast %cst_9 : f32 to vector<64x1024xf32>
    %13 = arith.maximumf %11, %12 : vector<64x1024xf32>
    %14 = vector.extract_strided_slice %13 {offsets = [0, 0], sizes = [32, 1024], strides = [1, 1]} : vector<64x1024xf32> to vector<32x1024xf32>
    %15 = vector.extract_strided_slice %13 {offsets = [32, 0], sizes = [32, 1024], strides = [1, 1]} : vector<64x1024xf32> to vector<32x1024xf32>
    %16 = arith.subf %14, %15 : vector<32x1024xf32>
    %17 = math.absf %16 : vector<32x1024xf32>
    %cst_10 = arith.constant dense<0.000000e+00> : vector<2x1024xf32>
    %18 = tpu.matmul %2, %17, %cst_10 {dimension_numbers = #tpu.dot_dimension_numbers<[1], [0], [0], [1], [0, 0, 1, 1], [], []>} : vector<2x32xf32>, vector<32x1024xf32>, vector<2x1024xf32> -> vector<2x1024xf32>
    %19 = vector.broadcast %3 : vector<2x1xf32> to vector<2x1024xf32>
    %20 = arith.addf %18, %19 : vector<2x1024xf32>
    %c0_11 = arith.constant 0 : index
    %c0_12 = arith.constant 0 : index
    %21 = arith.index_cast %5 : i32 to index
    %22 = vector.load %arg7[%c0_11, %c0_12, %21] : memref<1x2x4096xf32, #tpu.memory_space<vmem>>, vector<1x2x1024xf32>
    %23 = vector.shape_cast %22 : vector<1x2x1024xf32> to vector<2x1024xf32>
    %24 = vector.shape_cast %20 : vector<2x1024xf32> to vector<1x2x1024xf32>
    tpu.vector_store %arg7[%c0_11, %c0_12, %21], %24 {strides = array<i32>} : memref<1x2x4096xf32, #tpu.memory_space<vmem>>, vector<1x2x1024xf32>,
    %c1_i32 = arith.constant 1 : i32
    %c1024_i32_13 = arith.constant 1024 : i32
    %25 = arith.muli %c1_i32, %c1024_i32_13 : i32
    %26 = tpu.assume_multiple %25, 1024 : i32
    %c0_14 = arith.constant 0 : index
    %c0_15 = arith.constant 0 : index
    %27 = arith.index_cast %26 : i32 to index
    %28 = vector.load %arg2[%c0_14, %c0_15, %27] : memref<1x12x4096xf32, #tpu.memory_space<vmem>>, vector<1x12x1024xf32>
    %29 = vector.shape_cast %28 : vector<1x12x1024xf32> to vector<12x1024xf32>
    %cst_16 = arith.constant dense<0.000000e+00> : vector<64x1024xf32>
    %30 = tpu.matmul %0, %29, %cst_16 {dimension_numbers = #tpu.dot_dimension_numbers<[1], [0], [0], [1], [0, 0, 1, 1], [], []>} : vector<64x12xf32>, vector<12x1024xf32>, vector<64x1024xf32> -> vector<64x1024xf32>
    %31 = vector.broadcast %1 : vector<64x1xf32> to vector<64x1024xf32>
    %32 = arith.addf %30, %31 : vector<64x1024xf32>
    %cst_17 = arith.constant 0.000000e+00 : f32
    %33 = vector.broadcast %cst_17 : f32 to vector<64x1024xf32>
    %34 = arith.maximumf %32, %33 : vector<64x1024xf32>
    %35 = vector.extract_strided_slice %34 {offsets = [0, 0], sizes = [32, 1024], strides = [1, 1]} : vector<64x1024xf32> to vector<32x1024xf32>
    %36 = vector.extract_strided_slice %34 {offsets = [32, 0], sizes = [32, 1024], strides = [1, 1]} : vector<64x1024xf32> to vector<32x1024xf32>
    %37 = arith.subf %35, %36 : vector<32x1024xf32>
    %38 = math.absf %37 : vector<32x1024xf32>
    %cst_18 = arith.constant dense<0.000000e+00> : vector<2x1024xf32>
    %39 = tpu.matmul %2, %38, %cst_18 {dimension_numbers = #tpu.dot_dimension_numbers<[1], [0], [0], [1], [0, 0, 1, 1], [], []>} : vector<2x32xf32>, vector<32x1024xf32>, vector<2x1024xf32> -> vector<2x1024xf32>
    %40 = vector.broadcast %3 : vector<2x1xf32> to vector<2x1024xf32>
    %41 = arith.addf %39, %40 : vector<2x1024xf32>
    %c0_19 = arith.constant 0 : index
    %c0_20 = arith.constant 0 : index
    %42 = arith.index_cast %26 : i32 to index
    %43 = vector.load %arg7[%c0_19, %c0_20, %42] : memref<1x2x4096xf32, #tpu.memory_space<vmem>>, vector<1x2x1024xf32>
    %44 = vector.shape_cast %43 : vector<1x2x1024xf32> to vector<2x1024xf32>
    %45 = vector.shape_cast %41 : vector<2x1024xf32> to vector<1x2x1024xf32>
    tpu.vector_store %arg7[%c0_19, %c0_20, %42], %45 {strides = array<i32>} : memref<1x2x4096xf32, #tpu.memory_space<vmem>>, vector<1x2x1024xf32>,
    %c2_i32 = arith.constant 2 : i32
    %c1024_i32_21 = arith.constant 1024 : i32
    %46 = arith.muli %c2_i32, %c1024_i32_21 : i32
    %47 = tpu.assume_multiple %46, 1024 : i32
    %c0_22 = arith.constant 0 : index
    %c0_23 = arith.constant 0 : index
    %48 = arith.index_cast %47 : i32 to index
    %49 = vector.load %arg2[%c0_22, %c0_23, %48] : memref<1x12x4096xf32, #tpu.memory_space<vmem>>, vector<1x12x1024xf32>
    %50 = vector.shape_cast %49 : vector<1x12x1024xf32> to vector<12x1024xf32>
    %cst_24 = arith.constant dense<0.000000e+00> : vector<64x1024xf32>
    %51 = tpu.matmul %0, %50, %cst_24 {dimension_numbers = #tpu.dot_dimension_numbers<[1], [0], [0], [1], [0, 0, 1, 1], [], []>} : vector<64x12xf32>, vector<12x1024xf32>, vector<64x1024xf32> -> vector<64x1024xf32>
    %52 = vector.broadcast %1 : vector<64x1xf32> to vector<64x1024xf32>
    %53 = arith.addf %51, %52 : vector<64x1024xf32>
    %cst_25 = arith.constant 0.000000e+00 : f32
    %54 = vector.broadcast %cst_25 : f32 to vector<64x1024xf32>
    %55 = arith.maximumf %53, %54 : vector<64x1024xf32>
    %56 = vector.extract_strided_slice %55 {offsets = [0, 0], sizes = [32, 1024], strides = [1, 1]} : vector<64x1024xf32> to vector<32x1024xf32>
    %57 = vector.extract_strided_slice %55 {offsets = [32, 0], sizes = [32, 1024], strides = [1, 1]} : vector<64x1024xf32> to vector<32x1024xf32>
    %58 = arith.subf %56, %57 : vector<32x1024xf32>
    %59 = math.absf %58 : vector<32x1024xf32>
    %cst_26 = arith.constant dense<0.000000e+00> : vector<2x1024xf32>
    %60 = tpu.matmul %2, %59, %cst_26 {dimension_numbers = #tpu.dot_dimension_numbers<[1], [0], [0], [1], [0, 0, 1, 1], [], []>} : vector<2x32xf32>, vector<32x1024xf32>, vector<2x1024xf32> -> vector<2x1024xf32>
    %61 = vector.broadcast %3 : vector<2x1xf32> to vector<2x1024xf32>
    %62 = arith.addf %60, %61 : vector<2x1024xf32>
    %c0_27 = arith.constant 0 : index
    %c0_28 = arith.constant 0 : index
    %63 = arith.index_cast %47 : i32 to index
    %64 = vector.load %arg7[%c0_27, %c0_28, %63] : memref<1x2x4096xf32, #tpu.memory_space<vmem>>, vector<1x2x1024xf32>
    %65 = vector.shape_cast %64 : vector<1x2x1024xf32> to vector<2x1024xf32>
    %66 = vector.shape_cast %62 : vector<2x1024xf32> to vector<1x2x1024xf32>
    tpu.vector_store %arg7[%c0_27, %c0_28, %63], %66 {strides = array<i32>} : memref<1x2x4096xf32, #tpu.memory_space<vmem>>, vector<1x2x1024xf32>,
    %c3_i32 = arith.constant 3 : i32
    %c1024_i32_29 = arith.constant 1024 : i32
    %67 = arith.muli %c3_i32, %c1024_i32_29 : i32
    %68 = tpu.assume_multiple %67, 1024 : i32
    %c0_30 = arith.constant 0 : index
    %c0_31 = arith.constant 0 : index
    %69 = arith.index_cast %68 : i32 to index
    %70 = vector.load %arg2[%c0_30, %c0_31, %69] : memref<1x12x4096xf32, #tpu.memory_space<vmem>>, vector<1x12x1024xf32>
    %71 = vector.shape_cast %70 : vector<1x12x1024xf32> to vector<12x1024xf32>
    %cst_32 = arith.constant dense<0.000000e+00> : vector<64x1024xf32>
    %72 = tpu.matmul %0, %71, %cst_32 {dimension_numbers = #tpu.dot_dimension_numbers<[1], [0], [0], [1], [0, 0, 1, 1], [], []>} : vector<64x12xf32>, vector<12x1024xf32>, vector<64x1024xf32> -> vector<64x1024xf32>
    %73 = vector.broadcast %1 : vector<64x1xf32> to vector<64x1024xf32>
    %74 = arith.addf %72, %73 : vector<64x1024xf32>
    %cst_33 = arith.constant 0.000000e+00 : f32
    %75 = vector.broadcast %cst_33 : f32 to vector<64x1024xf32>
    %76 = arith.maximumf %74, %75 : vector<64x1024xf32>
    %77 = vector.extract_strided_slice %76 {offsets = [0, 0], sizes = [32, 1024], strides = [1, 1]} : vector<64x1024xf32> to vector<32x1024xf32>
    %78 = vector.extract_strided_slice %76 {offsets = [32, 0], sizes = [32, 1024], strides = [1, 1]} : vector<64x1024xf32> to vector<32x1024xf32>
    %79 = arith.subf %77, %78 : vector<32x1024xf32>
    %80 = math.absf %79 : vector<32x1024xf32>
    %cst_34 = arith.constant dense<0.000000e+00> : vector<2x1024xf32>
    %81 = tpu.matmul %2, %80, %cst_34 {dimension_numbers = #tpu.dot_dimension_numbers<[1], [0], [0], [1], [0, 0, 1, 1], [], []>} : vector<2x32xf32>, vector<32x1024xf32>, vector<2x1024xf32> -> vector<2x1024xf32>
    %82 = vector.broadcast %3 : vector<2x1xf32> to vector<2x1024xf32>
    %83 = arith.addf %81, %82 : vector<2x1024xf32>
    %c0_35 = arith.constant 0 : index
    %c0_36 = arith.constant 0 : index
    %84 = arith.index_cast %68 : i32 to index
    %85 = vector.load %arg7[%c0_35, %c0_36, %84] : memref<1x2x4096xf32, #tpu.memory_space<vmem>>, vector<1x2x1024xf32>
    %86 = vector.shape_cast %85 : vector<1x2x1024xf32> to vector<2x1024xf32>
    %87 = vector.shape_cast %83 : vector<2x1024xf32> to vector<1x2x1024xf32>
    tpu.vector_store %arg7[%c0_35, %c0_36, %84], %87 {strides = array<i32>} : memref<1x2x4096xf32, #tpu.memory_space<vmem>>, vector<1x2x1024xf32>,
    %c4_i32 = arith.constant 4 : i32
    return
  }
  func.func @transform_0(%arg0: i32, %arg1: i32) -> (i32, i32, i32) {
    %c0_i32 = arith.constant 0 : i32
    %c0_i32_0 = arith.constant 0 : i32
    return %arg0, %c0_i32, %arg1 : i32, i32, i32
  }
  func.func @transform_1(%arg0: i32, %arg1: i32) -> (i32, i32) {
    %c0_i32 = arith.constant 0 : i32
    %c0_i32_0 = arith.constant 0 : i32
    %c0_i32_1 = arith.constant 0 : i32
    return %c0_i32, %c0_i32_0 : i32, i32
  }
  func.func @transform_2(%arg0: i32, %arg1: i32) -> (i32, i32) {
    %c0_i32 = arith.constant 0 : i32
    %c0_i32_0 = arith.constant 0 : i32
    %c0_i32_1 = arith.constant 0 : i32
    return %c0_i32, %c0_i32_0 : i32, i32
  }
  func.func @transform_3(%arg0: i32, %arg1: i32) -> (i32, i32) {
    %c0_i32 = arith.constant 0 : i32
    %c0_i32_0 = arith.constant 0 : i32
    %c0_i32_1 = arith.constant 0 : i32
    return %c0_i32, %c0_i32_0 : i32, i32
  }
  func.func @transform_4(%arg0: i32, %arg1: i32) -> (i32, i32) {
    %c0_i32 = arith.constant 0 : i32
    %c0_i32_0 = arith.constant 0 : i32
    %c0_i32_1 = arith.constant 0 : i32
    return %c0_i32, %c0_i32_0 : i32, i32
  }
  func.func @transform_5(%arg0: i32, %arg1: i32) -> (i32, i32, i32) {
    %c0_i32 = arith.constant 0 : i32
    %c0_i32_0 = arith.constant 0 : i32
    return %arg0, %c0_i32, %arg1 : i32, i32, i32
  }
}

</mosaic_0001>

<bundles_post_ra>
// kernel: tpu_custom_call.1
= control target key start
LH: loop header
LB: loop body
LE: loop exit
PB: predicated region body
PF: predicated region fallthrough
CT: control target
= control target key end

     0   :  { %10 = vsyncpa [#allocation3], 0  ;;  %s6243_s0 = inlined_call_operand.vmem [shape: f32[2,12,4096], index: 0, kind: input, shape index: {}]   ;;  %s6244_s1 = inlined_call_operand.vmem [shape: f32[64,12], index: 1, kind: input, shape index: {}]   ;;  %s6245_s2 = inlined_call_operand.vmem [shape: f32[64,1], index: 2, kind: input, shape index: {}]   ;;  %s6246_s3 = inlined_call_operand.vmem [shape: f32[2,32], index: 3, kind: input, shape index: {}]   ;;  %s6247_s4 = inlined_call_operand.vmem [shape: f32[2,1], index: 4, kind: input, shape index: {}]   ;;  %s6248_s5 = inlined_call_operand.hbm [shape: f32[2,2,4096], index: 5, kind: output, shape index: {}]  }
   0x1   :  { %12 = vsyncpa [#allocation3 + $0x1], 0  ;;  %s4673_s18 = smov 0   ;;  %s4675_s19 = smov 0  }
   0x2   :  { %s4677_s20 = smov 0   ;;  %s4679_s21 = smov 0  }
   0x3   :  { %s4681_s22 = smov 0   ;;  %s4683_s23 = smov 0  }
   0x4 LB: > { %s4246_s24 = sadd.s32 4294967295, %s4637_s23   ;;  %s4247_s25 = sadd.s32 4294967294, %s4637_s23   ;;  %s4637_s23 = sphi %s4683_s23, %s18_s23   ;;  %s4633_s22 = sphi %s4681_s22, %s6350_s22   ;;  %s4629_s21 = sphi %s4679_s21, %s6349_s21   ;;  %s4625_s20 = sphi %s4677_s20, %s6348_s20   ;;  %s4621_s19 = sphi %s4675_s19, %s6347_s19   ;;  %s4617_s18 = sphi %s4673_s18, %s6346_s18  }
   0x5   : > { %s30_s26 = sadd.s32 1, %s4633_s22  ;;  %s151_s27 = sadd.s32 1, %s4625_s20 }
   0x6   : > { %p32_p0 = scmp.ge.s32.totalorder %s30_s26, 2  ;;  %p161_p1 = scmp.ne.s32.totalorder %s4625_s20, %s4621_s19 }
   0x7   : > { %p162_p2 = scmp.eq.s32.totalorder %s4246_s24, 1  ;;  %p167_p3 = scmp.ne.s32.totalorder %s4621_s19, %s4617_s18 }
   0x8   : > { %s6352_s26 = smov (%p32_p0, %s30_s26), 0  ;;  %p168_p5 = scmp.eq.s32.totalorder %s4247_s25, 1 }
   0x9   : > { %p4713_p4 = por %p162_p2, %p161_p1  ;;  %s146_s29 = ssub.s32 %s4633_s22, %s6352_s26 }
   0xa   : > { %p4250_p6 = scmp.ge.s32.totalorder %s4637_s23, 1  ;;  %p149_p7 = scmp.eq.s32.totalorder %s146_s29, 0 }
   0xb   : > { %p4720_p8 = por %p168_p5, %p167_p3  ;;  %p211_p9 = scmp.lt.s32.totalorder %s4637_s23, 3 }
   0xc   : > { %s4726_s6 = scalar_select %p149_p7, %s4625_s20, %s151_s27  }
   0xd   : > { %p212_p10 = pnand %p4250_p6, %p211_p9 }
   0xf   : > { %215 = sbr.rel (%p212_p10) target bundleno = 1349 (0x545), region = 40 }
  0x14   : > { %p244_p11 = scmp.lt.s32.totalorder %s4629_s21, 1  ;;  %v6249_v0 = vmov 0.0   ;;  %v4640_v1 = vmov 0   ;;  %v265_v2 = vld [vmem:[%s6245_s2 + $0x18] sm:$0xff]  ;;  %vm353_vm0 = vcmask 1043456   ;;  %v264_v3 = vld [vmem:[%s6245_s2 + $0x10] sm:$0xff] }
  0x15   : > { %442 = vmatprep.mubr.f32.mxu0 %v6249_v0  ;;  %555 = vmatprep.mubr.f32.mxu1 %v6249_v0  ;;  %v4758_v12 = vld [vmem:[%s6244_s1] sm:$0xff]  ;;  %vm328_vm1 = vcmask 97280   ;;  %v4773_v17 = vld [vmem:[%s6244_s1 + $0x8] sm:$0xff]  ;;  %v4792_v22 = vld [vmem:[%s6244_s1 + $0x10] sm:$0xff]  ;;  %vm963_vm2 = vcmask 261120   ;;  %s240_s27 = sand.u32 1, %s4621_s19  }
  0x16   : > { %s245_s7 = scalar_select %p244_p11, %s4629_s21, 1  ;;  %4549 = vset.pattern.permute.xlu0 %v4640_v1  ;;  %4550 = vset.pattern.permute.xlu1 %v4640_v1  ;;  %v269_v23 = vld [vmem:[%s6245_s2 + $0x38] sm:$0xff]  ;;  %v268_v24 = vld [vmem:[%s6245_s2 + $0x30] sm:$0xff]  ;;  %v263_v26 = vld [vmem:[%s6245_s2 + $0x8] sm:$0xff] }
  0x17   : > { %305 = vperm.xlu0 %4549, %v265_v2   ;;  %300 = vperm.xlu1 %4550, %v264_v3   ;;  %v4809_v25 = vld [vmem:[%s6244_s1 + $0x18] sm:$0xff]  ;;  %v267_v27 = vld [vmem:[%s6245_s2 + $0x28] sm:$0xff]  ;;  %v4826_v28 = vld [vmem:[%s6244_s1 + $0x20] sm:$0xff]  ;;  %s4251_s29 = sshll.u32 %s240_s27, 6  ;;  %s4490_s16 = sshll.u32 %s4629_s21, 10 }
  0x18   : > { %s4489_s10 = sshll.u32 %s245_s7, 9  ;;  %6281 = vst [vmem:[#allocation5_spill] sm:$0xff] %v4826_v28  ;;  %v262_v29 = vld [vmem:[%s6245_s2] sm:$0xff]  ;;  %v4843_v31 = vld [vmem:[%s6244_s1 + $0x28] sm:$0xff]  ;;  %v4857_v33 = vld [vmem:[%s6244_s1 + $0x30] sm:$0xff]  ;;  %s5280_s7 = scalar_lea.vmem [#allocation2], %s4251_s29 }
  0x19   : > { %s4741_s15 = scalar_lea.vmem %s6243_s0, %s4489_s10  ;;  %v266_v30 = vld [vmem:[%s6245_s2 + $0x20] sm:$0xff]  ;;  %6282 = vst [vmem:[#allocation6_spill] sm:$0xff] %v4843_v31  ;;  %6283 = vst [vmem:[#allocation7_spill] sm:$0xff] %v4857_v33  ;;  %v4868_v34 = vld [vmem:[%s6244_s1 + $0x38] sm:$0xff]  ;;  %s4170_s17 = sshll.u32 %s5280_s7, 4  ;;  %s4171_s17 = int_to_ptr.vmem [resolvable:$true] %s4170_s17 }
  0x1a   : > { %v281_v4 = vld [vmem:[%s4741_s15 + $0x108] sm:$0xf]  ;;  %v283_v5 = vld [vmem:[%s4741_s15 + $0x118] sm:$0xf]  ;;  %v280_v6 = vld [vmem:[%s4741_s15 + $0x100] sm:$0xf]  ;;  %s4168_s29 = scalar_lea.hbm %s6248_s5, %s4490_s16 }
  0x1b   : > { %4254 = vmatprep.subr.msk.mxu0 %vm353_vm0, %v281_v4  ;;  %4264 = vmatprep.subr.msk.mxu1 %vm353_vm0, %v283_v5  ;;  %v282_v7 = vld [vmem:[%s4741_s15 + $0x110] sm:$0xf]  ;;  %v273_v8 = vld [vmem:[%s4741_s15 + $0x8] sm:$0xff]  ;;  %v275_v9 = vld [vmem:[%s4741_s15 + $0x18] sm:$0xff]  ;;  %6284 = vst [vmem:[#allocation8_spill] sm:$0xff] %v4868_v34  ;;  %s4154_s8 = scalar_lea.sflag [#allocation3], %s240_s27 }
  0x1c   : > { %4255 = vmatpush1.msk.msra.mxu0 %vm353_vm0, %v280_v6  ;;  %4265 = vmatpush1.msk.msra.mxu1 %vm353_vm0, %v282_v7  ;;  %v272_v10 = vld [vmem:[%s4741_s15] sm:$0xff]  ;;  %v274_v11 = vld [vmem:[%s4741_s15 + $0x10] sm:$0xff]  ;;  %v285_v13 = vld [vmem:[%s4741_s15 + $0x128] sm:$0xf]  ;;  %s4561_s9 = scalar_lea.vmem %s4171_s17, 1024  ;;  %s4642_s21 = smov [#allocation2]  }
  0x1d   : > { %408 = vmatprep.subr.mxu0 %v273_v8  ;;  %521 = vmatprep.subr.mxu1 %v275_v9  ;;  %v287_v14 = vld [vmem:[%s4741_s15 + $0x138] sm:$0xf]  ;;  %v284_v15 = vld [vmem:[%s4741_s15 + $0x120] sm:$0xf]  ;;  %v286_v16 = vld [vmem:[%s4741_s15 + $0x130] sm:$0xf]  ;;  %p4562_p12 = scmp.ne.s32.totalorder %s4171_s17, %s4561_s9 }
  0x1e   : > { %409 = vmatpush1.msra.mxu0 %v272_v10  ;;  %522 = vmatpush1.msra.mxu1 %v274_v11  ;;  %v277_v18 = vld [vmem:[%s4741_s15 + $0x28] sm:$0xff]  ;;  %v279_v19 = vld [vmem:[%s4741_s15 + $0x38] sm:$0xff]  ;;  %v276_v20 = vld [vmem:[%s4741_s15 + $0x20] sm:$0xff]  ;;  %s4565_s10 = sshll.u32 %s4642_s21, 4  ;;  %s4566_s10 = int_to_ptr.vmem [resolvable:$false] %s4565_s10 }
  0x1f   : > { %4256 = vmatmul.mubr.msk.f32.vlgmr.msra.gmra.mxu0 %vm328_vm1, %v4758_v12  ;;  %4266 = vmatmul.mubr.msk.f32.vlgmr.msra.gmra.mxu1 %vm328_vm1, %v4758_v12  ;;  %v278_v21 = vld [vmem:[%s4741_s15 + $0x30] sm:$0xff]  ;;  %v271_v32 = vld [vmem:[%s6247_s4] sm:$0x3]  ;;  %p4563_p13 = pnand %p4562_p12, %p4713_p4  ;;  %s4567_s11 = scalar_lea.vmem %s4566_s10, 2048 }
  0x20   : > { %4274 = vmatprep.subr.msk.mxu0 %vm353_vm0, %v285_v13  ;;  %4284 = vmatprep.subr.msk.mxu1 %vm353_vm0, %v287_v14  ;;  %p4568_p1 = scmp.lt.s32.totalorder %s4171_s17, %s4566_s10  ;;  %p4569_p2 = scmp.lt.s32.totalorder %s4567_s11, %s4561_s9 }
  0x21   : > { %4275 = vmatpush1.msk.msra.mxu0 %vm353_vm0, %v284_v15  ;;  %4285 = vmatpush1.msk.msra.mxu1 %vm353_vm0, %v286_v16  ;;  %p4564_p0 = pneg %p4563_p13 }
  0x22   : > { %448 = vmatprep.mubr.f32.mxu0 %v6249_v0  ;;  %561 = vmatprep.mubr.f32.mxu1 %v6249_v0  ;;  %p4570_p3 = por %p4569_p2, %p4568_p1 }
  0x23   : > { %4257 = vmatmul.mubr.msk.f32.gmra.mxu0 %vm328_vm1, %v4773_v17  ;;  %4267 = vmatmul.mubr.msk.f32.gmra.mxu1 %vm328_vm1, %v4773_v17 }
  0x24   : > { %454 = vmatprep.mubr.f32.mxu0 %v6249_v0  ;;  %567 = vmatprep.mubr.f32.mxu1 %v6249_v0  ;;  %p4571_p5 = pnand %p4570_p3, %p4564_p0 }
  0x25   : > { %634 = vmatprep.subr.mxu0 %v277_v18  ;;  %747 = vmatprep.subr.mxu1 %v279_v19 }
  0x26   : > { %635 = vmatpush1.msra.mxu0 %v276_v20  ;;  %748 = vmatpush1.msra.mxu1 %v278_v21 }
  0x27   : > { %4258 = vmatmul.mubr.msk.f32.gmra.mxu0 %vm328_vm1, %v4792_v22  ;;  %4268 = vmatmul.mubr.msk.f32.gmra.mxu1 %vm328_vm1, %v4792_v22 }
  0x28   : > { %460 = vmatprep.mubr.f32.mxu0 %v6249_v0  ;;  %573 = vmatprep.mubr.f32.mxu1 %v6249_v0 }
  0x29   : > { %325 = vperm.xlu0 %4549, %v269_v23   ;;  %320 = vperm.xlu1 %4550, %v268_v24  }
  0x2b   : > { %4259 = vmatmul.mubr.msk.f32.gmra.mxu0 %vm328_vm1, %v4809_v25  ;;  %4269 = vmatmul.mubr.msk.f32.gmra.mxu1 %vm328_vm1, %v4809_v25 }
  0x2c   : > { %466 = vmatprep.mubr.f32.mxu0 %v6249_v0  ;;  %579 = vmatprep.mubr.f32.mxu1 %v6249_v0 }
  0x2d   : > { %295 = vperm.xlu0 %4549, %v263_v26   ;;  %315 = vperm.xlu1 %4550, %v267_v27  }
  0x2f   : > { %4260 = vmatmul.mubr.msk.f32.gmra.mxu0 %vm328_vm1, %v4826_v28  ;;  %4270 = vmatmul.mubr.msk.f32.gmra.mxu1 %vm328_vm1, %v4826_v28 }
  0x30   : > { %472 = vmatprep.mubr.f32.mxu0 %v6249_v0  ;;  %585 = vmatprep.mubr.f32.mxu1 %v6249_v0 }
  0x31   : > { %290 = vperm.xlu0 %4549, %v262_v29   ;;  %310 = vperm.xlu1 %4550, %v266_v30  }
  0x33   : > { %4261 = vmatmul.mubr.msk.f32.gmra.mxu0 %vm328_vm1, %v4843_v31  ;;  %4271 = vmatmul.mubr.msk.f32.gmra.mxu1 %vm328_vm1, %v4843_v31 }
  0x34   : > { %478 = vmatprep.mubr.f32.mxu0 %v6249_v0  ;;  %591 = vmatprep.mubr.f32.mxu1 %v6249_v0 }
  0x35   : > { %960 = vperm.xlu0 %4549, %v271_v32  }
  0x37   : > { %4262 = vmatmul.mubr.msk.f32.gmra.mxu0 %vm328_vm1, %v4857_v33  ;;  %4272 = vmatmul.mubr.msk.f32.gmra.mxu1 %vm328_vm1, %v4857_v33 }
  0x38   : > { %484 = vmatprep.mubr.f32.mxu0 %v6249_v0  ;;  %597 = vmatprep.mubr.f32.mxu1 %v6249_v0 }
  0x3b   : > { %4263 = vmatmul.mubr.msk.f32.gmra.mxu0 %vm328_vm1, %v4868_v34  ;;  %4273 = vmatmul.mubr.msk.f32.gmra.mxu1 %vm328_vm1, %v4868_v34 }
  0x3c   : > { %668 = vmatprep.mubr.f32.mxu0 %v6249_v0  ;;  %781 = vmatprep.mubr.f32.mxu1 %v6249_v0 }
  0x3f   : > { %4276 = vmatmul.mubr.msk.f32.vlgmr.msra.gmra.mxu0 %vm328_vm1, %v4758_v12  ;;  %4286 = vmatmul.mubr.msk.f32.vlgmr.msra.gmra.mxu1 %vm328_vm1, %v4758_v12 }
  0x40   : > { %674 = vmatprep.mubr.f32.mxu0 %v6249_v0  ;;  %787 = vmatprep.mubr.f32.mxu1 %v6249_v0 }
  0x43   : > { %4277 = vmatmul.mubr.msk.f32.gmra.mxu0 %vm328_vm1, %v4773_v17  ;;  %4287 = vmatmul.mubr.msk.f32.gmra.mxu1 %vm328_vm1, %v4773_v17 }
  0x44   : > { %680 = vmatprep.mubr.f32.mxu0 %v6249_v0  ;;  %793 = vmatprep.mubr.f32.mxu1 %v6249_v0 }
  0x47   : > { %4278 = vmatmul.mubr.msk.f32.gmra.mxu0 %vm328_vm1, %v4792_v22  ;;  %4288 = vmatmul.mubr.msk.f32.gmra.mxu1 %vm328_vm1, %v4792_v22 }
  0x48   : > { %686 = vmatprep.mubr.f32.mxu0 %v6249_v0  ;;  %799 = vmatprep.mubr.f32.mxu1 %v6249_v0 }
  0x4b   : > { %4279 = vmatmul.mubr.msk.f32.gmra.mxu0 %vm328_vm1, %v4809_v25  ;;  %4289 = vmatmul.mubr.msk.f32.gmra.mxu1 %vm328_vm1, %v4809_v25 }
  0x4c   : > { %692 = vmatprep.mubr.f32.mxu0 %v6249_v0  ;;  %805 = vmatprep.mubr.f32.mxu1 %v6249_v0 }
  0x4f   : > { %4280 = vmatmul.mubr.msk.f32.gmra.mxu0 %vm328_vm1, %v4826_v28  ;;  %4290 = vmatmul.mubr.msk.f32.gmra.mxu1 %vm328_vm1, %v4826_v28 }
  0x50   : > { %698 = vmatprep.mubr.f32.mxu0 %v6249_v0  ;;  %811 = vmatprep.mubr.f32.mxu1 %v6249_v0 }
  0x53   : > { %4281 = vmatmul.mubr.msk.f32.gmra.mxu0 %vm328_vm1, %v4843_v31  ;;  %4291 = vmatmul.mubr.msk.f32.gmra.mxu1 %vm328_vm1, %v4843_v31 }
  0x54   : > { %704 = vmatprep.mubr.f32.mxu0 %v6249_v0  ;;  %817 = vmatprep.mubr.f32.mxu1 %v6249_v0 }
  0x57   : > { %4282 = vmatmul.mubr.msk.f32.gmra.mxu0 %vm328_vm1, %v4857_v33  ;;  %4292 = vmatmul.mubr.msk.f32.gmra.mxu1 %vm328_vm1, %v4857_v33 }
  0x58   : > { %710 = vmatprep.mubr.f32.mxu0 %v6249_v0  ;;  %823 = vmatprep.mubr.f32.mxu1 %v6249_v0 }
  0x5b   : > { %4283 = vmatmul.mubr.msk.f32.gmra.mxu0 %vm328_vm1, %v4868_v34  ;;  %4293 = vmatmul.mubr.msk.f32.gmra.mxu1 %vm328_vm1, %v4868_v34 }
  0x5c   : > { %1031 = vmatprep.mubr.f32.mxu0 %v6249_v0  ;;  %1102 = vmatprep.mubr.f32.mxu1 %v6249_v0 }
  0x92   : > { %v4924_v35 = vpop.permute.xlu0 %305  ;;  %v4928_v45 = vpop.permute.xlu1 %300 }
  0xa4   : > { %v4926_v40 = vpop.permute.xlu0 %325  ;;  %v4932_v53 = vpop.permute.xlu1 %320 }
  0xa8   : > { %v4930_v48 = vpop.permute.xlu0 %295  ;;  %v4942_v63 = vpop.permute.xlu1 %315 }
  0xa9   : > { %6285 = vst [vmem:[#allocation9_spill] sm:$0xff] %v4942_v63 }
  0xac   : > { %v4934_v56 = vpop.permute.xlu0 %290 }
  0xdf   : > { %v444_v36 = vpop.f32.mrf.mxu0  ;;  %v557_v37 = vpop.f32.mrf.mxu1 }
  0xe0   : > { %v4937_v61 = vadd.f32 %v444_v36, %v4934_v56  ;;  %v4940_v62 = vadd.f32 %v557_v37, %v4934_v56 }
  0xe1   : > { %v446_v38 = vpop.f32.mrf.mxu0  ;;  %v559_v39 = vpop.f32.mrf.mxu1 }
  0xe2   : > { %v4945_v1 = vadd.f32 %v446_v38, %v4934_v56  ;;  %v4948_v2 = vadd.f32 %v559_v39, %v4934_v56  ;;  %v4986_v38 = vpop.permute.xlu1 %310 }
  0xe3   : > { %v450_v41 = vpop.f32.mrf.mxu0  ;;  %v563_v42 = vpop.f32.mrf.mxu1  ;;  %6286 = vst [vmem:[#allocation10_spill] sm:$0xff] %v4986_v38 }
  0xe4   : > { %v4951_v5 = vadd.f32 %v450_v41, %v4930_v48  ;;  %v4954_v6 = vadd.f32 %v563_v42, %v4930_v48 }
  0xe5   : > { %v452_v43 = vpop.f32.mrf.mxu0  ;;  %v565_v44 = vpop.f32.mrf.mxu1 }
  0xe6   : > { %v4957_v7 = vadd.f32 %v452_v43, %v4930_v48  ;;  %v4960_v8 = vadd.f32 %v565_v44, %v4930_v48 }
  0xe7   : > { %v456_v46 = vpop.f32.mrf.mxu0  ;;  %v569_v47 = vpop.f32.mrf.mxu1 }
  0xe8   : > { %v4963_v9 = vadd.f32 %v456_v46, %v4928_v45  ;;  %v4966_v10 = vadd.f32 %v569_v47, %v4928_v45 }
  0xe9   : > { %v458_v49 = vpop.f32.mrf.mxu0  ;;  %v571_v50 = vpop.f32.mrf.mxu1 }
  0xea   : > { %v4969_v11 = vadd.f32 %v458_v49, %v4928_v45  ;;  %v4972_v13 = vadd.f32 %v571_v50, %v4928_v45  ;;  %v846_v39 = vmax.f32 %v4963_v9, 0.0  ;;  %v848_v41 = vmax.f32 %v4966_v10, 0.0 }
  0xeb   : > { %v462_v51 = vpop.f32.mrf.mxu0  ;;  %v575_v52 = vpop.f32.mrf.mxu1 }
  0xec   : > { %v463_v19 = vadd.f32 %v462_v51, %v4924_v35  ;;  %v576_v20 = vadd.f32 %v575_v52, %v4924_v35  ;;  %v847_v42 = vmax.f32 %v4969_v11, 0.0  ;;  %v849_v43 = vmax.f32 %v4972_v13, 0.0 }
  0xed   : > { %v464_v54 = vpop.f32.mrf.mxu0  ;;  %v577_v55 = vpop.f32.mrf.mxu1 }
  0xee   : > { %v465_v24 = vadd.f32 %v464_v54, %v4924_v35  ;;  %v578_v26 = vadd.f32 %v577_v55, %v4924_v35  ;;  %v854_v47 = vmax.f32 %v463_v19, 0.0  ;;  %v856_v49 = vmax.f32 %v576_v20, 0.0 }
  0xef   : > { %v468_v57 = vpop.f32.mrf.mxu0  ;;  %v581_v58 = vpop.f32.mrf.mxu1 }
  0xf0   : > { %v855_v52 = vmax.f32 %v465_v24, 0.0  ;;  %v857_v54 = vmax.f32 %v578_v26, 0.0  ;;  %v4995_v55 = vadd.f32 %v468_v57, %v4986_v38  ;;  %v4998_v9 = vadd.f32 %v581_v58, %v4986_v38 }
  0xf1   : > { %v470_v59 = vpop.f32.mrf.mxu0  ;;  %v583_v60 = vpop.f32.mrf.mxu1 }
  0xf2   : > { %v471_v13 = vadd.f32 %v470_v59, %v4986_v38  ;;  %v584_v0 = vadd.f32 %v583_v60, %v4986_v38 }
  0xf3   : > { %v474_v3 = vpop.f32.mrf.mxu0  ;;  %v587_v4 = vpop.f32.mrf.mxu1 }
  0xf4   : > { %v475_v18 = vadd.f32 %v474_v3, %v4942_v63  ;;  %v588_v59 = vadd.f32 %v587_v4, %v4942_v63 }
  0xf5   : > { %v476_v14 = vpop.f32.mrf.mxu0  ;;  %v589_v15 = vpop.f32.mrf.mxu1 }
  0xf6   : > { %v590_v24 = vadd.f32 %v589_v15, %v4942_v63 }
  0xf7   : > { %v480_v27 = vpop.f32.mrf.mxu0  ;;  %v593_v29 = vpop.f32.mrf.mxu1 }
  0xf8   : > { %v481_v19 = vadd.f32 %v480_v27, %v4932_v53  ;;  %v594_v20 = vadd.f32 %v593_v29, %v4932_v53  ;;  %v873_v3 = vmax.f32 %v590_v24, 0.0 }
  0xf9   : > { %v482_v44 = vpop.f32.mrf.mxu0  ;;  %v595_v46 = vpop.f32.mrf.mxu1 }
  0xfa   : > { %v483_v50 = vadd.f32 %v482_v44, %v4932_v53  ;;  %v596_v51 = vadd.f32 %v595_v46, %v4932_v53  ;;  %v477_v44 = vadd.f32 %v476_v14, %v4942_v63  ;;  %v878_v32 = vmax.f32 %v481_v19, 0.0 }
  0xfb   : > { %v486_v10 = vpop.f32.mrf.mxu0  ;;  %v599_v11 = vpop.f32.mrf.mxu1  ;;  %v880_v30 = vmax.f32 %v594_v20, 0.0  ;;  %v862_v19 = vmax.f32 %v4995_v55, 0.0  ;;  %v864_v20 = vmax.f32 %v4998_v9, 0.0 }
  0xfc   : > { %v487_v57 = vadd.f32 %v486_v10, %v4926_v40  ;;  %v600_v26 = vadd.f32 %v599_v11, %v4926_v40  ;;  %v879_v16 = vmax.f32 %v483_v50, 0.0  ;;  %v881_v60 = vmax.f32 %v596_v51, 0.0 }
  0xfd   : > { %v488_v58 = vpop.f32.mrf.mxu0  ;;  %v601_v46 = vpop.f32.mrf.mxu1  ;;  %v863_v10 = vmax.f32 %v471_v13, 0.0  ;;  %v865_v11 = vmax.f32 %v584_v0, 0.0  ;;  %v871_v37 = vmax.f32 %v477_v44, 0.0  ;;  %v910_v44 = vsub.f32 %v846_v39, %v878_v32 }
  0xfe   : > { %v886_v23 = vmax.f32 %v487_v57, 0.0  ;;  %v888_v27 = vmax.f32 %v600_v26, 0.0  ;;  %v489_v29 = vadd.f32 %v488_v58, %v4926_v40  ;;  %v602_v14 = vadd.f32 %v601_v46, %v4926_v40 }
  0xff   : > { %v5012_v21 = vpop.f32.mrf.mxu0  ;;  %v5014_v15 = vpop.f32.mrf.mxu1  ;;  %v870_v57 = vmax.f32 %v475_v18, 0.0  ;;  %v872_v26 = vmax.f32 %v588_v59, 0.0  ;;  %v911_v34 = vsub.f32 %v847_v42, %v879_v16  ;;  %v913_v33 = vsub.f32 %v849_v43, %v881_v60 }
 0x100   : > { %v887_v36 = vmax.f32 %v489_v29, 0.0  ;;  %v889_v4 = vmax.f32 %v602_v14, 0.0  ;;  %v918_v58 = vsub.f32 %v854_v47, %v886_v23  ;;  %v920_v46 = vsub.f32 %v856_v49, %v888_v27 }
 0x101   : > { %v5016_v50 = vpop.f32.mrf.mxu0  ;;  %v5018_v51 = vpop.f32.mrf.mxu1  ;;  %v912_v24 = vsub.f32 %v848_v41, %v880_v30  ;;  %v6287_v29 = vmax.f32 %v4957_v7, 0.0  ;;  %v6288_v23 = vmax.f32 %v4960_v8, 0.0  ;;  %v6289_v49 = vmax.f32 %v4951_v5, 0.0 }
 0x102   : > { %v919_v31 = vsub.f32 %v855_v52, %v887_v36  ;;  %v921_v28 = vsub.f32 %v857_v54, %v889_v4  ;;  %v6290_v54 = vmax.f32 %v4954_v6, 0.0  ;;  %v950_v32 = vand.u32 2147483647, %v918_v58 }
 0x103   : > { %v5020_v13 = vpop.f32.mrf.mxu0  ;;  %v5022_v0 = vpop.f32.mrf.mxu1  ;;  %v903_v18 = vsub.f32 %v6287_v29, %v871_v37  ;;  %v905_v47 = vsub.f32 %v6288_v23, %v873_v3  ;;  %v902_v52 = vsub.f32 %v6289_v49, %v870_v57  ;;  %v952_v30 = vand.u32 2147483647, %v920_v46  ;;  %v5049_v57 = vld [vmem:[%s6246_s3] sm:$0x3] }
 0x104   : > { %v951_v42 = vand.u32 2147483647, %v919_v31  ;;  %v953_v43 = vand.u32 2147483647, %v921_v28  ;;  %v904_v55 = vsub.f32 %v6290_v54, %v872_v26  ;;  %v6291_v7 = vmax.f32 %v4945_v1, 0.0 }
 0x105   : > { %v5030_v16 = vpop.f32.mrf.mxu0  ;;  %v5032_v36 = vpop.f32.mrf.mxu1  ;;  %v6292_v8 = vmax.f32 %v4948_v2, 0.0  ;;  %v943_v31 = vand.u32 2147483647, %v911_v34  ;;  %v945_v28 = vand.u32 2147483647, %v913_v33  ;;  %v6293_v5 = vmax.f32 %v4937_v61, 0.0 }
 0x106   : > { %v895_v37 = vsub.f32 %v6291_v7, %v863_v10  ;;  %991 = vmatprep.subr.mxu0 %v951_v42  ;;  %1062 = vmatprep.subr.mxu1 %v953_v43  ;;  %v6294_v6 = vmax.f32 %v4940_v62, 0.0  ;;  %v942_v27 = vand.u32 2147483647, %v910_v44  ;;  %v944_v14 = vand.u32 2147483647, %v912_v24 }
 0x107   : > { %v897_v39 = vsub.f32 %v6292_v8, %v865_v11  ;;  %v682_v41 = vpop.f32.mrf.mxu0  ;;  %v795_v9 = vpop.f32.mrf.mxu1  ;;  %v894_v59 = vsub.f32 %v6293_v5, %v862_v19  ;;  %992 = vmatpush1.msra.mxu0 %v950_v32  ;;  %1063 = vmatpush1.msra.mxu1 %v952_v30  ;;  %v935_v10 = vand.u32 2147483647, %v903_v18  ;;  %v937_v11 = vand.u32 2147483647, %v905_v47 }
 0x108   : > { %v896_v60 = vsub.f32 %v6294_v6, %v864_v20  ;;  %993 = vmatprep.subr.mxu0 %v943_v31  ;;  %1064 = vmatprep.subr.mxu1 %v945_v28  ;;  %v934_v3 = vand.u32 2147483647, %v902_v52  ;;  %v936_v4 = vand.u32 2147483647, %v904_v55  ;;  %v927_v61 = vand.u32 2147483647, %v895_v37 }
 0x109   : > { %v684_v1 = vpop.f32.mrf.mxu0  ;;  %v797_v2 = vpop.f32.mrf.mxu1  ;;  %994 = vmatpush1.msra.mxu0 %v942_v27  ;;  %1065 = vmatpush1.msra.mxu1 %v944_v14  ;;  %v929_v62 = vand.u32 2147483647, %v897_v39  ;;  %v926_v26 = vand.u32 2147483647, %v894_v59  ;;  %v6295_v24 = vmov 0.0   ;;  %v5059_v23 = vadd.f32 %v5012_v21, %v4934_v56 }
 0x10a   : > { %995 = vmatprep.subr.mxu0 %v935_v10  ;;  %1066 = vmatprep.subr.mxu1 %v937_v11  ;;  %v928_v58 = vand.u32 2147483647, %v896_v60  ;;  %v5063_v47 = vadd.f32 %v5014_v15, %v4934_v56  ;;  %v5067_v42 = vadd.f32 %v5016_v50, %v4934_v56  ;;  %v5071_v43 = vadd.f32 %v5018_v51, %v4934_v56 }
 0x10b   : > { %v688_v33 = vpop.f32.mrf.mxu0  ;;  %v801_v34 = vpop.f32.mrf.mxu1  ;;  %996 = vmatpush1.msra.mxu0 %v934_v3  ;;  %1067 = vmatpush1.msra.mxu1 %v936_v4  ;;  %v5075_v54 = vadd.f32 %v5020_v13, %v4930_v48  ;;  %v5079_v21 = vadd.f32 %v5022_v0, %v4930_v48  ;;  %v5083_v15 = vadd.f32 %v5030_v16, %v4930_v48 }
 0x10c   : > { %997 = vmatprep.subr.mxu0 %v927_v61  ;;  %1068 = vmatprep.subr.mxu1 %v929_v62  ;;  %v5087_v50 = vadd.f32 %v5032_v36, %v4930_v48  ;;  %v5090_v51 = vadd.f32 %v682_v41, %v4928_v45  ;;  %v5093_v55 = vadd.f32 %v795_v9, %v4928_v45 }
 0x10d   : > { %v690_v46 = vpop.f32.mrf.mxu0  ;;  %v803_v19 = vpop.f32.mrf.mxu1  ;;  %998 = vmatpush1.msra.mxu0 %v926_v26  ;;  %1069 = vmatpush1.msra.mxu1 %v928_v58  ;;  %v5096_v13 = vadd.f32 %v684_v1, %v4928_v45  ;;  %v5099_v0 = vadd.f32 %v797_v2, %v4928_v45  ;;  %v689_v36 = vadd.f32 %v688_v33, %v4924_v35  ;;  %v842_v5 = vmax.f32 %v5075_v54, 0.0 }
 0x10e   : > { %4294 = vmatmul.mubr.msk.f32.vlgmr.msra.gmra.mxu0 %vm963_vm2, %v5049_v57  ;;  %4295 = vmatmul.mubr.msk.f32.vlgmr.msra.gmra.mxu1 %vm963_vm2, %v5049_v57  ;;  %v802_v37 = vadd.f32 %v801_v34, %v4924_v35  ;;  %v691_v41 = vadd.f32 %v690_v46, %v4924_v35  ;;  %v804_v9 = vadd.f32 %v803_v19, %v4924_v35  ;;  %v844_v59 = vmax.f32 %v5079_v21, 0.0 }
 0x10f   : > { %v694_v20 = vpop.f32.mrf.mxu0  ;;  %v807_v44 = vpop.f32.mrf.mxu1  ;;  %1173 = vmatprep.mubr.f32.mxu0 %v6295_v24  ;;  %1244 = vmatprep.mubr.f32.mxu1 %v6295_v24  ;;  %v843_v6 = vmax.f32 %v5083_v15, 0.0  ;;  %v845_v60 = vmax.f32 %v5087_v50, 0.0  ;;  %v850_v27 = vmax.f32 %v5090_v51, 0.0  ;;  %v852_v14 = vmax.f32 %v5093_v55, 0.0 }
 0x110   : > { %v851_v1 = vmax.f32 %v5096_v13, 0.0  ;;  %v853_v2 = vmax.f32 %v5099_v0, 0.0  ;;  %v858_v3 = vmax.f32 %v689_v36, 0.0  ;;  %v860_v4 = vmax.f32 %v802_v37, 0.0 }
 0x111   : > { %v696_v29 = vpop.f32.mrf.mxu0  ;;  %v809_v18 = vpop.f32.mrf.mxu1  ;;  %v859_v61 = vmax.f32 %v691_v41, 0.0  ;;  %v861_v62 = vmax.f32 %v804_v9, 0.0  ;;  %v695_v26 = vadd.f32 %v694_v20, %v4986_v38  ;;  %v808_v58 = vadd.f32 %v807_v44, %v4986_v38 }
 0x112   : > { %v697_v54 = vadd.f32 %v696_v29, %v4986_v38  ;;  %v810_v21 = vadd.f32 %v809_v18, %v4986_v38 }
 0x113   : > { %v700_v49 = vpop.f32.mrf.mxu0  ;;  %v813_v52 = vpop.f32.mrf.mxu1 }
 0x114   : > { %v701_v36 = vadd.f32 %v700_v49, %v4942_v63  ;;  %v814_v29 = vadd.f32 %v813_v52, %v4942_v63 }
 0x115   : > { %v702_v32 = vpop.f32.mrf.mxu0  ;;  %v815_v30 = vpop.f32.mrf.mxu1 }
 0x116   : > { %v703_v51 = vadd.f32 %v702_v32, %v4942_v63  ;;  %v816_v55 = vadd.f32 %v815_v30, %v4942_v63  ;;  %v869_v30 = vmax.f32 %v810_v21, 0.0  ;;  %v874_v39 = vmax.f32 %v701_v36, 0.0 }
 0x117   : > { %v706_v31 = vpop.f32.mrf.mxu0  ;;  %v819_v28 = vpop.f32.mrf.mxu1  ;;  %v876_v49 = vmax.f32 %v814_v29, 0.0  ;;  %v866_v63 = vmax.f32 %v695_v26, 0.0  ;;  %v6296_v36 = vmax.f32 %v5067_v42, 0.0  ;;  %v4308_v26 = vld [vmem:[%s4741_s15 + $0x150] sm:$0xf]  ;;  %v4301_v29 = vld [vmem:[%s4741_s15 + $0x58] sm:$0xff] }
 0x118   : > { %v707_v15 = vadd.f32 %v706_v31, %v4932_v53  ;;  %v820_v50 = vadd.f32 %v819_v28, %v4932_v53  ;;  %v867_v28 = vmax.f32 %v697_v54, 0.0 }
 0x119   : > { %v708_v10 = vpop.f32.mrf.mxu0  ;;  %v821_v11 = vpop.f32.mrf.mxu1 }
 0x11a   : > { %v709_v33 = vadd.f32 %v708_v10, %v4932_v53  ;;  %v822_v34 = vadd.f32 %v821_v11, %v4932_v53  ;;  %v882_v10 = vmax.f32 %v707_v15, 0.0  ;;  %v884_v11 = vmax.f32 %v820_v50, 0.0 }
 0x11b   : > { %v712_v46 = vpop.f32.mrf.mxu0  ;;  %v825_v19 = vpop.f32.mrf.mxu1 }
 0x11c   : > { %v713_v13 = vadd.f32 %v712_v46, %v4926_v40  ;;  %v826_v20 = vadd.f32 %v825_v19, %v4926_v40  ;;  %v883_v37 = vmax.f32 %v709_v33, 0.0  ;;  %v885_v18 = vmax.f32 %v822_v34, 0.0 }
 0x11d   : > { %v714_v0 = vpop.f32.mrf.mxu0  ;;  %v827_v44 = vpop.f32.mrf.mxu1  ;;  %v875_v46 = vmax.f32 %v703_v51, 0.0  ;;  %v877_v19 = vmax.f32 %v816_v55, 0.0  ;;  %v914_v38 = vsub.f32 %v850_v27, %v882_v10  ;;  %v906_v51 = vsub.f32 %v842_v5, %v874_v39  ;;  %v4303_v10 = vld [vmem:[%s4741_s15 + $0x68] sm:$0xff] }
 0x11e   : > { %v890_v41 = vmax.f32 %v713_v13, 0.0  ;;  %v892_v9 = vmax.f32 %v826_v20, 0.0  ;;  %v715_v31 = vadd.f32 %v714_v0, %v4926_v40  ;;  %v828_v32 = vadd.f32 %v827_v44, %v4926_v40 }
 0x11f   : > { %v915_v33 = vsub.f32 %v851_v1, %v883_v37  ;;  %v917_v34 = vsub.f32 %v853_v2, %v885_v18  ;;  %v868_v0 = vmax.f32 %v808_v58, 0.0  ;;  %v916_v44 = vsub.f32 %v852_v14, %v884_v11  ;;  %v4299_v58 = vld [vmem:[%s4741_s15 + $0x48] sm:$0xff]  ;;  %v4298_v37 = vld [vmem:[%s4741_s15 + $0x40] sm:$0xff]  ;;  %v4300_v18 = vld [vmem:[%s4741_s15 + $0x50] sm:$0xff] }
 0x120   : > { %v891_v7 = vmax.f32 %v715_v31, 0.0  ;;  %v893_v16 = vmax.f32 %v828_v32, 0.0  ;;  %v922_v8 = vsub.f32 %v858_v3, %v890_v41  ;;  %v924_v52 = vsub.f32 %v860_v4, %v892_v9  ;;  %v4307_v4 = vld [vmem:[%s4741_s15 + $0x148] sm:$0xf]  ;;  %v4313_v9 = vld [vmem:[%s4741_s15 + $0x178] sm:$0xf] }
 0x121   : > { %v907_v54 = vsub.f32 %v843_v6, %v875_v46  ;;  %v909_v21 = vsub.f32 %v845_v60, %v877_v19  ;;  %v908_v55 = vsub.f32 %v844_v59, %v876_v49  ;;  %v899_v3 = vsub.f32 %v6296_v36, %v867_v28  ;;  %v4311_v41 = vld [vmem:[%s4741_s15 + $0x168] sm:$0xf]  ;;  %v4310_v28 = vld [vmem:[%s4741_s15 + $0x160] sm:$0xf]  ;;  %v4305_v11 = vld [vmem:[%s4741_s15 + $0x78] sm:$0xff] }
 0x122   : > { %v923_v13 = vsub.f32 %v859_v61, %v891_v7  ;;  %v925_v20 = vsub.f32 %v861_v62, %v893_v16  ;;  %v954_v31 = vand.u32 2147483647, %v922_v8  ;;  %v956_v32 = vand.u32 2147483647, %v924_v52  ;;  %v4309_v61 = vld [vmem:[%s4741_s15 + $0x158] sm:$0xf] }
 0x123   : > { %v6297_v1 = vmax.f32 %v5071_v43, 0.0  ;;  %v947_v16 = vand.u32 2147483647, %v915_v33  ;;  %v949_v7 = vand.u32 2147483647, %v917_v34  ;;  %v6298_v27 = vmax.f32 %v5059_v23, 0.0 }
 0x124   : > { %v955_v15 = vand.u32 2147483647, %v923_v13  ;;  %v957_v50 = vand.u32 2147483647, %v925_v20  ;;  %v6299_v60 = vmax.f32 %v5063_v47, 0.0  ;;  %v4302_v46 = vld [vmem:[%s4741_s15 + $0x60] sm:$0xff] }
 0x125   : > { %v901_v2 = vsub.f32 %v6297_v1, %v869_v30  ;;  %v898_v6 = vsub.f32 %v6298_v27, %v866_v63  ;;  %v946_v39 = vand.u32 2147483647, %v914_v38  ;;  %v948_v5 = vand.u32 2147483647, %v916_v44  ;;  %v4306_v62 = vld [vmem:[%s4741_s15 + $0x140] sm:$0xf]  ;;  %v5267_v44 = vpop.permute.xlu0 %960 }
 0x126   : > { %1133 = vmatprep.subr.mxu0 %v955_v15  ;;  %1204 = vmatprep.subr.mxu1 %v957_v50  ;;  %v900_v14 = vsub.f32 %v6299_v60, %v868_v0  ;;  %v939_v42 = vand.u32 2147483647, %v907_v54  ;;  %v941_v43 = vand.u32 2147483647, %v909_v21  ;;  %v938_v8 = vand.u32 2147483647, %v906_v51 }
 0x127   : > { %1134 = vmatpush1.msra.mxu0 %v954_v31  ;;  %1205 = vmatpush1.msra.mxu1 %v956_v32  ;;  %v940_v59 = vand.u32 2147483647, %v908_v55  ;;  %v931_v63 = vand.u32 2147483647, %v899_v3  ;;  %v933_v38 = vand.u32 2147483647, %v901_v2 }
 0x128   : > { %1135 = vmatprep.subr.mxu0 %v947_v16  ;;  %1206 = vmatprep.subr.mxu1 %v949_v7  ;;  %v930_v23 = vand.u32 2147483647, %v898_v6  ;;  %v932_v47 = vand.u32 2147483647, %v900_v14  ;;  %v4312_v30 = vld [vmem:[%s4741_s15 + $0x170] sm:$0xf] }
 0x129   : > { %1136 = vmatpush1.msra.mxu0 %v946_v39  ;;  %1207 = vmatpush1.msra.mxu1 %v948_v5  ;;  %v4304_v19 = vld [vmem:[%s4741_s15 + $0x70] sm:$0xff]  ;;  %v6300_v49 = vld [vmem:[#allocation5_spill] sm:$0xff]  ;;  %v6301_v52 = vld [vmem:[#allocation6_spill] sm:$0xff] }
 0x12a   : > { %1137 = vmatprep.subr.mxu0 %v939_v42  ;;  %1208 = vmatprep.subr.mxu1 %v941_v43  ;;  %v6302_v33 = vld [vmem:[#allocation7_spill] sm:$0xff]  ;;  %v6303_v34 = vld [vmem:[#allocation8_spill] sm:$0xff]  ;;  %6304 = vst [vmem:[#allocation5_spill] sm:$0xff] %v5267_v44 }
 0x12b   : > { %1138 = vmatpush1.msra.mxu0 %v938_v8  ;;  %1209 = vmatpush1.msra.mxu1 %v940_v59 }
 0x12c   : > { %1139 = vmatprep.subr.mxu0 %v931_v63  ;;  %1210 = vmatprep.subr.mxu1 %v933_v38 }
 0x12d   : > { %1140 = vmatpush1.msra.mxu0 %v930_v23  ;;  %1211 = vmatpush1.msra.mxu1 %v932_v47 }
 0x12e   : > { %4296 = vmatmul.mubr.msk.f32.vlgmr.msra.gmra.mxu0 %vm963_vm2, %v5049_v57  ;;  %4297 = vmatmul.mubr.msk.f32.vlgmr.msra.gmra.mxu1 %vm963_vm2, %v5049_v57 }
 0x12f   : > { %4314 = vmatprep.subr.msk.mxu0 %vm353_vm0, %v4307_v4  ;;  %4324 = vmatprep.subr.msk.mxu1 %vm353_vm0, %v4309_v61 }
 0x130   : > { %4315 = vmatpush1.msk.msra.mxu0 %vm353_vm0, %v4306_v62  ;;  %4325 = vmatpush1.msk.msra.mxu1 %vm353_vm0, %v4308_v26 }
 0x131   : > { %1368 = vmatprep.subr.mxu0 %v4299_v58  ;;  %1481 = vmatprep.subr.mxu1 %v4301_v29 }
 0x132   : > { %1369 = vmatpush1.msra.mxu0 %v4298_v37  ;;  %1402 = vmatprep.mubr.f32.mxu0 %v6295_v24 }
 0x133   : > { %1482 = vmatpush1.msra.mxu1 %v4300_v18  ;;  %1515 = vmatprep.mubr.f32.mxu1 %v6295_v24 }
 0x134   : > { %4316 = vmatmul.mubr.msk.f32.vlgmr.msra.gmra.mxu0 %vm328_vm1, %v4758_v12  ;;  %4326 = vmatmul.mubr.msk.f32.vlgmr.msra.gmra.mxu1 %vm328_vm1, %v4758_v12 }
 0x135   : > { %4334 = vmatprep.subr.msk.mxu0 %vm353_vm0, %v4311_v41  ;;  %4344 = vmatprep.subr.msk.mxu1 %vm353_vm0, %v4313_v9 }
 0x136   : > { %4335 = vmatpush1.msk.msra.mxu0 %vm353_vm0, %v4310_v28  ;;  %4345 = vmatpush1.msk.msra.mxu1 %vm353_vm0, %v4312_v30 }
 0x137   : > { %1408 = vmatprep.mubr.f32.mxu0 %v6295_v24  ;;  %1521 = vmatprep.mubr.f32.mxu1 %v6295_v24 }
 0x138   : > { %4317 = vmatmul.mubr.msk.f32.gmra.mxu0 %vm328_vm1, %v4773_v17  ;;  %4327 = vmatmul.mubr.msk.f32.gmra.mxu1 %vm328_vm1, %v4773_v17 }
 0x139   : > { %1414 = vmatprep.mubr.f32.mxu0 %v6295_v24  ;;  %1527 = vmatprep.mubr.f32.mxu1 %v6295_v24 }
 0x13a   : > { %1594 = vmatprep.subr.mxu0 %v4303_v10  ;;  %1707 = vmatprep.subr.mxu1 %v4305_v11 }
 0x13b   : > { %1595 = vmatpush1.msra.mxu0 %v4302_v46  ;;  %1708 = vmatpush1.msra.mxu1 %v4304_v19 }
 0x13c   : > { %4318 = vmatmul.mubr.msk.f32.gmra.mxu0 %vm328_vm1, %v4792_v22  ;;  %4328 = vmatmul.mubr.msk.f32.gmra.mxu1 %vm328_vm1, %v4792_v22 }
 0x13d   : > { %1420 = vmatprep.mubr.f32.mxu0 %v6295_v24  ;;  %1533 = vmatprep.mubr.f32.mxu1 %v6295_v24 }
 0x140   : > { %4319 = vmatmul.mubr.msk.f32.gmra.mxu0 %vm328_vm1, %v4809_v25  ;;  %4329 = vmatmul.mubr.msk.f32.gmra.mxu1 %vm328_vm1, %v4809_v25 }
 0x141   : > { %1426 = vmatprep.mubr.f32.mxu0 %v6295_v24  ;;  %1539 = vmatprep.mubr.f32.mxu1 %v6295_v24 }
 0x144   : > { %4320 = vmatmul.mubr.msk.f32.gmra.mxu0 %vm328_vm1, %v6300_v49  ;;  %4330 = vmatmul.mubr.msk.f32.gmra.mxu1 %vm328_vm1, %v6300_v49 }
 0x145   : > { %1432 = vmatprep.mubr.f32.mxu0 %v6295_v24  ;;  %1545 = vmatprep.mubr.f32.mxu1 %v6295_v24 }
 0x148   : > { %4321 = vmatmul.mubr.msk.f32.gmra.mxu0 %vm328_vm1, %v6301_v52  ;;  %4331 = vmatmul.mubr.msk.f32.gmra.mxu1 %vm328_vm1, %v6301_v52 }
 0x149   : > { %1438 = vmatprep.mubr.f32.mxu0 %v6295_v24  ;;  %1551 = vmatprep.mubr.f32.mxu1 %v6295_v24 }
 0x14c   : > { %4322 = vmatmul.mubr.msk.f32.gmra.mxu0 %vm328_vm1, %v6302_v33  ;;  %4332 = vmatmul.mubr.msk.f32.gmra.mxu1 %vm328_vm1, %v6302_v33 }
 0x14d   : > { %1444 = vmatprep.mubr.f32.mxu0 %v6295_v24  ;;  %1557 = vmatprep.mubr.f32.mxu1 %v6295_v24 }
 0x150   : > { %4323 = vmatmul.mubr.msk.f32.gmra.mxu0 %vm328_vm1, %v6303_v34  ;;  %4333 = vmatmul.mubr.msk.f32.gmra.mxu1 %vm328_vm1, %v6303_v34 }
 0x151   : > { %1628 = vmatprep.mubr.f32.mxu0 %v6295_v24  ;;  %1741 = vmatprep.mubr.f32.mxu1 %v6295_v24 }
 0x154   : > { %4336 = vmatmul.mubr.msk.f32.vlgmr.msra.gmra.mxu0 %vm328_vm1, %v4758_v12  ;;  %4346 = vmatmul.mubr.msk.f32.vlgmr.msra.gmra.mxu1 %vm328_vm1, %v4758_v12  ;;  %v4641_v12 = vmov 1983009808  }
 0x155   : > { %1634 = vmatprep.mubr.f32.mxu0 %v6295_v24  ;;  %1747 = vmatprep.mubr.f32.mxu1 %v6295_v24 }
 0x158   : > { %4337 = vmatmul.mubr.msk.f32.gmra.mxu0 %vm328_vm1, %v4773_v17  ;;  %4347 = vmatmul.mubr.msk.f32.gmra.mxu1 %vm328_vm1, %v4773_v17  ;;  %v1262_v17 = vunpack.c.l.s4 %v4641_v12 }
 0x159   : > { %1640 = vmatprep.mubr.f32.mxu0 %v6295_v24  ;;  %1753 = vmatprep.mubr.f32.mxu1 %v6295_v24 }
 0x15c   : > { %4338 = vmatmul.mubr.msk.f32.gmra.mxu0 %vm328_vm1, %v4792_v22  ;;  %4348 = vmatmul.mubr.msk.f32.gmra.mxu1 %vm328_vm1, %v4792_v22  ;;  %v1264_v22 = vlaneseq }
 0x15d   : > { %1646 = vmatprep.mubr.f32.mxu0 %v6295_v24  ;;  %1759 = vmatprep.mubr.f32.mxu1 %v6295_v24 }
 0x15e   : > { %v1265_v13 = vshrl.u32 %v1264_v22, 7 }
 0x160   : > { %4339 = vmatmul.mubr.msk.f32.gmra.mxu0 %vm328_vm1, %v4809_v25  ;;  %4349 = vmatmul.mubr.msk.f32.gmra.mxu1 %vm328_vm1, %v4809_v25  ;;  %v1263_v25 = vunpack.c.0.s8 %v1262_v17 }
 0x161   : > { %1652 = vmatprep.mubr.f32.mxu0 %v6295_v24  ;;  %1765 = vmatprep.mubr.f32.mxu1 %v6295_v24 }
 0x162   : > { %v5269_v21 = vsub.s32 %v1263_v25, %v1265_v13 }
 0x164   : > { %4340 = vmatmul.mubr.msk.f32.gmra.mxu0 %vm328_vm1, %v6300_v49  ;;  %4350 = vmatmul.mubr.msk.f32.gmra.mxu1 %vm328_vm1, %v6300_v49  ;;  %6305 = vst [vmem:[#allocation6_spill] sm:$0xff] %v5269_v21 }
 0x165   : > { %1658 = vmatprep.mubr.f32.mxu0 %v6295_v24  ;;  %1771 = vmatprep.mubr.f32.mxu1 %v6295_v24 }
 0x168   : > { %4341 = vmatmul.mubr.msk.f32.gmra.mxu0 %vm328_vm1, %v6301_v52  ;;  %4351 = vmatmul.mubr.msk.f32.gmra.mxu1 %vm328_vm1, %v6301_v52 }
 0x169   : > { %1664 = vmatprep.mubr.f32.mxu0 %v6295_v24  ;;  %1777 = vmatprep.mubr.f32.mxu1 %v6295_v24 }
 0x16c   : > { %4342 = vmatmul.mubr.msk.f32.gmra.mxu0 %vm328_vm1, %v6302_v33  ;;  %4352 = vmatmul.mubr.msk.f32.gmra.mxu1 %vm328_vm1, %v6302_v33 }
 0x16d   : > { %1670 = vmatprep.mubr.f32.mxu0 %v6295_v24  ;;  %1783 = vmatprep.mubr.f32.mxu1 %v6295_v24 }
 0x170   : > { %4343 = vmatmul.mubr.msk.f32.gmra.mxu0 %vm328_vm1, %v6303_v34  ;;  %4353 = vmatmul.mubr.msk.f32.gmra.mxu1 %vm328_vm1, %v6303_v34 }
 0x171   : > { %1982 = vmatprep.mubr.f32.mxu0 %v6295_v24  ;;  %2053 = vmatprep.mubr.f32.mxu1 %v6295_v24 }
 0x1ce   : > { %v1033_v20 = vpop.f32.mrf.mxu0  ;;  %v1104_v0 = vpop.f32.mrf.mxu1 }
 0x1cf   : > { %v1034_v50 = vadd.f32 %v1033_v20, %v5267_v44  ;;  %v1105_v51 = vadd.f32 %v1104_v0, %v5267_v44 }
 0x1d0   : > { %v1035_v54 = vpop.f32.mrf.mxu0  ;;  %v1106_v15 = vpop.f32.mrf.mxu1 }
 0x1d1   : > { %v1036_v55 = vadd.f32 %v1035_v54, %v5267_v44  ;;  %v1107_v31 = vadd.f32 %v1106_v15, %v5267_v44 }
 0x1d3   : > { %v1259_v32 = vcombine.low %v1034_v50, %v1036_v55  ;;  %v1260_v36 = vcombine.low %v1105_v51, %v1107_v31 }
 0x1d5   : > { %v1267_v3 = vrot.slane %v1259_v32, %v5269_v21  ;;  %v1274_v1 = vrot.slane %v1260_v36, %v5269_v21 }
 0x1d7   : > { %v1275_v2 = vcombine.low %v1267_v3, %v1274_v1 }
 0x1d9   : > { %1295 = vst [vmem:[%s5280_s7] sm:$0xff] %v1275_v2 }
 0x1ee   : > { %v1175_v16 = vpop.f32.mrf.mxu0  ;;  %v1246_v7 = vpop.f32.mrf.mxu1 }
 0x1ef   : > { %v1176_v60 = vadd.f32 %v1175_v16, %v5267_v44  ;;  %v1247_v14 = vadd.f32 %v1246_v7, %v5267_v44 }
 0x1f0   : > { %v1177_v27 = vpop.f32.mrf.mxu0  ;;  %v1248_v6 = vpop.f32.mrf.mxu1 }
 0x1f1   : > { %v1178_v39 = vadd.f32 %v1177_v27, %v5267_v44  ;;  %v1249_v5 = vadd.f32 %v1248_v6, %v5267_v44 }
 0x1f3   : > { %v1276_v42 = vcombine.low %v1176_v60, %v1178_v39  ;;  %v1277_v43 = vcombine.low %v1247_v14, %v1249_v5 }
 0x1f4   : > { %v1404_v8 = vpop.f32.mrf.mxu0  ;;  %v1517_v59 = vpop.f32.mrf.mxu1 }
 0x1f5   : > { %v1284_v63 = vrot.slane %v1276_v42, %v5269_v21  ;;  %v1291_v38 = vrot.slane %v1277_v43, %v5269_v21  ;;  %v5291_v52 = vadd.f32 %v1404_v8, %v4934_v56  ;;  %v5294_v33 = vadd.f32 %v1517_v59, %v4934_v56 }
 0x1f6   : > { %v1406_v23 = vpop.f32.mrf.mxu0  ;;  %v1519_v47 = vpop.f32.mrf.mxu1 }
 0x1f7   : > { %v1292_v4 = vcombine.low %v1284_v63, %v1291_v38  ;;  %v5297_v34 = vadd.f32 %v1406_v23, %v4934_v56  ;;  %v5300_v12 = vadd.f32 %v1519_v47, %v4934_v56 }
 0x1f8   : > { %v1410_v61 = vpop.f32.mrf.mxu0  ;;  %v1523_v62 = vpop.f32.mrf.mxu1 }
 0x1f9   : > { %1296 = vst [vmem:[%s5280_s7 + $0x8] sm:$0xff] %v1292_v4  ;;  %v5303_v25 = vadd.f32 %v1410_v61, %v4930_v48  ;;  %v5306_v13 = vadd.f32 %v1523_v62, %v4930_v48 }
 0x1fa   : > { %v1412_v26 = vpop.f32.mrf.mxu0  ;;  %v1525_v58 = vpop.f32.mrf.mxu1 }
 0x1fb   : > { %v5309_v20 = vadd.f32 %v1412_v26, %v4930_v48  ;;  %v5312_v0 = vadd.f32 %v1525_v58, %v4930_v48 }
 0x1fc   : > { %v1416_v29 = vpop.f32.mrf.mxu0  ;;  %v1529_v37 = vpop.f32.mrf.mxu1 }
 0x1fd   : > { %v5315_v54 = vadd.f32 %v1416_v29, %v4928_v45  ;;  %v5318_v15 = vadd.f32 %v1529_v37, %v4928_v45  ;;  %v1799_v5 = vmax.f32 %v5309_v20, 0.0  ;;  %v1801_v42 = vmax.f32 %v5312_v0, 0.0  ;;  %v6306_v29 = vld [vmem:[#allocation10_spill] sm:$0xff]  ;;  %v6307_v0 = vld [vmem:[#allocation9_spill] sm:$0xff] }
 0x1fe   : > { %v1418_v18 = vpop.f32.mrf.mxu0  ;;  %v1531_v41 = vpop.f32.mrf.mxu1 }
 0x1ff   : > { %v5321_v50 = vadd.f32 %v1418_v18, %v4928_v45  ;;  %v5324_v51 = vadd.f32 %v1531_v41, %v4928_v45  ;;  %v1806_v43 = vmax.f32 %v5315_v54, 0.0  ;;  %v1808_v8 = vmax.f32 %v5318_v15, 0.0 }
 0x200   : > { %v1422_v9 = vpop.f32.mrf.mxu0  ;;  %v1535_v28 = vpop.f32.mrf.mxu1 }
 0x201   : > { %v1423_v3 = vadd.f32 %v1422_v9, %v4924_v35  ;;  %v1536_v1 = vadd.f32 %v1535_v28, %v4924_v35  ;;  %v1807_v59 = vmax.f32 %v5321_v50, 0.0  ;;  %v1809_v63 = vmax.f32 %v5324_v51, 0.0 }
 0x202   : > { %v1424_v30 = vpop.f32.mrf.mxu0  ;;  %v1537_v10 = vpop.f32.mrf.mxu1 }
 0x203   : > { %v1425_v7 = vadd.f32 %v1424_v30, %v4924_v35  ;;  %v1538_v27 = vadd.f32 %v1537_v10, %v4924_v35  ;;  %v1814_v47 = vmax.f32 %v1423_v3, 0.0  ;;  %v1816_v4 = vmax.f32 %v1536_v1, 0.0 }
 0x204   : > { %v1428_v11 = vpop.f32.mrf.mxu0  ;;  %v1541_v46 = vpop.f32.mrf.mxu1 }
 0x205   : > { %v1815_v26 = vmax.f32 %v1425_v7, 0.0  ;;  %v1817_v58 = vmax.f32 %v1538_v27, 0.0  ;;  %v5345_v37 = vadd.f32 %v1428_v11, %v6306_v29  ;;  %v5348_v18 = vadd.f32 %v1541_v46, %v6306_v29 }
 0x206   : > { %v1430_v19 = vpop.f32.mrf.mxu0  ;;  %v1543_v49 = vpop.f32.mrf.mxu1 }
 0x207   : > { %v1431_v28 = vadd.f32 %v1430_v19, %v6306_v29  ;;  %v1544_v30 = vadd.f32 %v1543_v49, %v6306_v29 }
 0x208   : > { %v1434_v17 = vpop.f32.mrf.mxu0  ;;  %v1547_v22 = vpop.f32.mrf.mxu1 }
 0x209   : > { %v1435_v3 = vadd.f32 %v1434_v17, %v6307_v0  ;;  %v1548_v19 = vadd.f32 %v1547_v22, %v6307_v0 }
 0x20a   : > { %v1436_v55 = vpop.f32.mrf.mxu0  ;;  %v1549_v31 = vpop.f32.mrf.mxu1 }
 0x20b   : > { %v1437_v54 = vadd.f32 %v1436_v55, %v6307_v0  ;;  %v1550_v15 = vadd.f32 %v1549_v31, %v6307_v0 }
 0x20c   : > { %v1440_v6 = vpop.f32.mrf.mxu0  ;;  %v1553_v60 = vpop.f32.mrf.mxu1 }
 0x20d   : > { %v1441_v10 = vadd.f32 %v1440_v6, %v4932_v53  ;;  %v1554_v20 = vadd.f32 %v1553_v60, %v4932_v53  ;;  %v1831_v36 = vmax.f32 %v1437_v54, 0.0  ;;  %v1833_v17 = vmax.f32 %v1550_v15, 0.0 }
 0x20e   : > { %v1442_v38 = vpop.f32.mrf.mxu0  ;;  %v1555_v23 = vpop.f32.mrf.mxu1 }
 0x20f   : > { %v1443_v61 = vadd.f32 %v1442_v38, %v4932_v53  ;;  %v1556_v62 = vadd.f32 %v1555_v23, %v4932_v53  ;;  %v1823_v38 = vmax.f32 %v1431_v28, 0.0  ;;  %v1825_v23 = vmax.f32 %v1544_v30, 0.0 }
 0x210   : > { %v1446_v41 = vpop.f32.mrf.mxu0  ;;  %v1559_v9 = vpop.f32.mrf.mxu1 }
 0x211   : > { %v1447_v11 = vadd.f32 %v1446_v41, %v4926_v40  ;;  %v1560_v50 = vadd.f32 %v1559_v9, %v4926_v40  ;;  %v1839_v1 = vmax.f32 %v1443_v61, 0.0  ;;  %v1841_v49 = vmax.f32 %v1556_v62, 0.0 }
 0x212   : > { %v1448_v46 = vpop.f32.mrf.mxu0  ;;  %v1561_v51 = vpop.f32.mrf.mxu1  ;;  %v1838_v41 = vmax.f32 %v1441_v10, 0.0  ;;  %v1840_v9 = vmax.f32 %v1554_v20, 0.0  ;;  %v1822_v10 = vmax.f32 %v5345_v37, 0.0  ;;  %v1824_v20 = vmax.f32 %v5348_v18, 0.0 }
 0x213   : > { %v1846_v7 = vmax.f32 %v1447_v11, 0.0  ;;  %v1848_v27 = vmax.f32 %v1560_v50, 0.0  ;;  %v1449_v6 = vadd.f32 %v1448_v46, %v4926_v40  ;;  %v1562_v55 = vadd.f32 %v1561_v51, %v4926_v40 }
 0x214   : > { %v5362_v60 = vpop.f32.mrf.mxu0  ;;  %v5364_v31 = vpop.f32.mrf.mxu1  ;;  %v1830_v11 = vmax.f32 %v1435_v3, 0.0  ;;  %v1832_v50 = vmax.f32 %v1548_v19, 0.0  ;;  %v1871_v16 = vsub.f32 %v1807_v59, %v1839_v1  ;;  %v1873_v2 = vsub.f32 %v1809_v63, %v1841_v49 }
 0x215   : > { %v1847_v32 = vmax.f32 %v1449_v6, 0.0  ;;  %v1849_v22 = vmax.f32 %v1562_v55, 0.0  ;;  %v1878_v46 = vsub.f32 %v1814_v47, %v1846_v7  ;;  %v1880_v51 = vsub.f32 %v1816_v4, %v1848_v27 }
 0x216   : > { %v5366_v61 = vpop.f32.mrf.mxu0  ;;  %v5368_v62 = vpop.f32.mrf.mxu1  ;;  %v1870_v54 = vsub.f32 %v1806_v43, %v1838_v41  ;;  %v1872_v15 = vsub.f32 %v1808_v8, %v1840_v9  ;;  %v1863_v6 = vsub.f32 %v1799_v5, %v1831_v36  ;;  %v1865_v55 = vsub.f32 %v1801_v42, %v1833_v17 }
 0x217   : > { %v1879_v39 = vsub.f32 %v1815_v26, %v1847_v32  ;;  %v1881_v14 = vsub.f32 %v1817_v58, %v1849_v22  ;;  %v6308_v59 = vmax.f32 %v5303_v25, 0.0  ;;  %v6309_v63 = vmax.f32 %v5306_v13, 0.0 }
 0x218   : > { %v5370_v28 = vpop.f32.mrf.mxu0  ;;  %v5372_v30 = vpop.f32.mrf.mxu1  ;;  %v1910_v58 = vand.u32 2147483647, %v1878_v46  ;;  %v1912_v1 = vand.u32 2147483647, %v1880_v51  ;;  %v6310_v37 = vmax.f32 %v5297_v34, 0.0  ;;  %v6311_v43 = vmax.f32 %v5300_v12, 0.0 }
 0x219   : > { %v1911_v3 = vand.u32 2147483647, %v1879_v39  ;;  %v1913_v19 = vand.u32 2147483647, %v1881_v14  ;;  %v1862_v32 = vsub.f32 %v6308_v59, %v1830_v11  ;;  %v1864_v26 = vsub.f32 %v6309_v63, %v1832_v50 }
 0x21a   : > { %v1638_v47 = vpop.f32.mrf.mxu0  ;;  %v1751_v4 = vpop.f32.mrf.mxu1  ;;  %v1855_v49 = vsub.f32 %v6310_v37, %v1823_v38  ;;  %v1857_v8 = vsub.f32 %v6311_v43, %v1825_v23  ;;  %v1903_v36 = vand.u32 2147483647, %v1871_v16  ;;  %v1905_v5 = vand.u32 2147483647, %v1873_v2 }
 0x21b   : > { %1942 = vmatprep.subr.mxu0 %v1911_v3  ;;  %2013 = vmatprep.subr.mxu1 %v1913_v19  ;;  %v6312_v25 = vmax.f32 %v5291_v52, 0.0  ;;  %v6313_v13 = vmax.f32 %v5294_v33, 0.0  ;;  %v1902_v7 = vand.u32 2147483647, %v1870_v54  ;;  %v1904_v27 = vand.u32 2147483647, %v1872_v15 }
 0x21c   : > { %v1642_v14 = vpop.f32.mrf.mxu0  ;;  %v1755_v39 = vpop.f32.mrf.mxu1  ;;  %1943 = vmatpush1.msra.mxu0 %v1910_v58  ;;  %2014 = vmatpush1.msra.mxu1 %v1912_v1  ;;  %v1895_v34 = vand.u32 2147483647, %v1863_v6  ;;  %v1897_v38 = vand.u32 2147483647, %v1865_v55  ;;  %v1894_v16 = vand.u32 2147483647, %v1862_v32  ;;  %v5396_v54 = vadd.f32 %v5362_v60, %v4934_v56 }
 0x21d   : > { %v1854_v42 = vsub.f32 %v6312_v25, %v1822_v10  ;;  %v1856_v18 = vsub.f32 %v6313_v13, %v1824_v20  ;;  %1944 = vmatprep.subr.mxu0 %v1903_v36  ;;  %2015 = vmatprep.subr.mxu1 %v1905_v5  ;;  %v1896_v23 = vand.u32 2147483647, %v1864_v26  ;;  %v1887_v41 = vand.u32 2147483647, %v1855_v49 }
 0x21e   : > { %v1644_v12 = vpop.f32.mrf.mxu0  ;;  %v1757_v2 = vpop.f32.mrf.mxu1  ;;  %1945 = vmatpush1.msra.mxu0 %v1902_v7  ;;  %2016 = vmatpush1.msra.mxu1 %v1904_v27  ;;  %v1889_v52 = vand.u32 2147483647, %v1857_v8  ;;  %v5400_v15 = vadd.f32 %v5364_v31, %v4934_v56  ;;  %v5404_v6 = vadd.f32 %v5366_v61, %v4934_v56  ;;  %v5412_v19 = vadd.f32 %v5370_v28, %v4930_v48 }
 0x21f   : > { %1946 = vmatprep.subr.mxu0 %v1895_v34  ;;  %2017 = vmatprep.subr.mxu1 %v1897_v38  ;;  %v1886_v17 = vand.u32 2147483647, %v1854_v42  ;;  %v1888_v22 = vand.u32 2147483647, %v1856_v18  ;;  %v5416_v60 = vadd.f32 %v5372_v30, %v4930_v48  ;;  %v5419_v31 = vadd.f32 %v1638_v47, %v4930_v48 }
 0x220   : > { %v1648_v33 = vpop.f32.mrf.mxu0  ;;  %v1761_v9 = vpop.f32.mrf.mxu1  ;;  %1947 = vmatpush1.msra.mxu0 %v1894_v16  ;;  %2018 = vmatpush1.msra.mxu1 %v1896_v23  ;;  %v5422_v61 = vadd.f32 %v1751_v4, %v4930_v48  ;;  %v5425_v59 = vadd.f32 %v1642_v14, %v4928_v45  ;;  %v5431_v32 = vadd.f32 %v1644_v12, %v4928_v45  ;;  %v1795_v1 = vmax.f32 %v5404_v6, 0.0 }
 0x221   : > { %1948 = vmatprep.subr.mxu0 %v1887_v41  ;;  %2019 = vmatprep.subr.mxu1 %v1889_v52  ;;  %v5434_v28 = vadd.f32 %v1757_v2, %v4928_v45  ;;  %v1649_v4 = vadd.f32 %v1648_v33, %v4924_v35  ;;  %v1762_v58 = vadd.f32 %v1761_v9, %v4924_v35  ;;  %v1802_v5 = vmax.f32 %v5412_v19, 0.0 }
 0x222   : > { %v1650_v11 = vpop.f32.mrf.mxu0  ;;  %v1763_v50 = vpop.f32.mrf.mxu1  ;;  %1949 = vmatpush1.msra.mxu0 %v1886_v17  ;;  %2020 = vmatpush1.msra.mxu1 %v1888_v22  ;;  %v1804_v14 = vmax.f32 %v5416_v60, 0.0  ;;  %v1805_v25 = vmax.f32 %v5422_v61, 0.0  ;;  %v1810_v42 = vmax.f32 %v5425_v59, 0.0  ;;  %v1811_v18 = vmax.f32 %v5431_v32, 0.0 }
 0x223   : > { %4354 = vmatmul.mubr.msk.f32.vlgmr.msra.gmra.mxu0 %vm963_vm2, %v5049_v57  ;;  %4355 = vmatmul.mubr.msk.f32.vlgmr.msra.gmra.mxu1 %vm963_vm2, %v5049_v57  ;;  %v5408_v57 = vadd.f32 %v5368_v62, %v4934_v56  ;;  %v5428_v62 = vadd.f32 %v1755_v39, %v4928_v45  ;;  %v1651_v49 = vadd.f32 %v1650_v11, %v4924_v35  ;;  %v1803_v39 = vmax.f32 %v5419_v31, 0.0 }
 0x224   : > { %v1654_v46 = vpop.f32.mrf.mxu0  ;;  %v1767_v51 = vpop.f32.mrf.mxu1  ;;  %2124 = vmatprep.mubr.f32.mxu0 %v6295_v24  ;;  %2195 = vmatprep.mubr.f32.mxu1 %v6295_v24  ;;  %v1764_v43 = vadd.f32 %v1763_v50, %v4924_v35  ;;  %v1813_v7 = vmax.f32 %v5434_v28, 0.0  ;;  %v1818_v38 = vmax.f32 %v1649_v4, 0.0  ;;  %v1820_v12 = vmax.f32 %v1762_v58, 0.0 }
 0x225   : > { %v1812_v13 = vmax.f32 %v5428_v62, 0.0  ;;  %v1819_v23 = vmax.f32 %v1651_v49, 0.0  ;;  %v1655_v52 = vadd.f32 %v1654_v46, %v6306_v29  ;;  %v1768_v33 = vadd.f32 %v1767_v51, %v6306_v29 }
 0x226   : > { %v1656_v10 = vpop.f32.mrf.mxu0  ;;  %v1769_v20 = vpop.f32.mrf.mxu1  ;;  %v1821_v41 = vmax.f32 %v1764_v43, 0.0 }
 0x227   : > { %v1657_v22 = vadd.f32 %v1656_v10, %v6306_v29  ;;  %v1770_v11 = vadd.f32 %v1769_v20, %v6306_v29  ;;  %v1826_v47 = vmax.f32 %v1655_v52, 0.0  ;;  %v4371_v52 = vld [vmem:[%s4741_s15 + $0x198] sm:$0xf] }
 0x228   : > { %v1660_v55 = vpop.f32.mrf.mxu0  ;;  %v1773_v3 = vpop.f32.mrf.mxu1 }
 0x229   : > { %v1661_v62 = vadd.f32 %v1660_v55, %v6307_v0  ;;  %v1774_v10 = vadd.f32 %v1773_v3, %v6307_v0  ;;  %v1827_v49 = vmax.f32 %v1657_v22, 0.0 }
 0x22a   : > { %v1662_v30 = vpop.f32.mrf.mxu0  ;;  %v1775_v63 = vpop.f32.mrf.mxu1 }
 0x22b   : > { %v1663_v60 = vadd.f32 %v1662_v30, %v6307_v0  ;;  %v1776_v31 = vadd.f32 %v1775_v63, %v6307_v0  ;;  %v1829_v63 = vmax.f32 %v1770_v11, 0.0  ;;  %v1836_v55 = vmax.f32 %v1774_v10, 0.0  ;;  %v5483_v10 = vld [vmem:[%s6246_s3] sm:$0x3] }
 0x22c   : > { %v1666_v8 = vpop.f32.mrf.mxu0  ;;  %v1779_v36 = vpop.f32.mrf.mxu1 }
 0x22d   : > { %v1667_v50 = vadd.f32 %v1666_v8, %v4932_v53  ;;  %v1780_v19 = vadd.f32 %v1779_v36, %v4932_v53  ;;  %v1835_v36 = vmax.f32 %v1663_v60, 0.0 }
 0x22e   : > { %v1668_v27 = vpop.f32.mrf.mxu0  ;;  %v1781_v34 = vpop.f32.mrf.mxu1 }
 0x22f   : > { %v1669_v2 = vadd.f32 %v1668_v27, %v4932_v53  ;;  %v1782_v16 = vadd.f32 %v1781_v34, %v4932_v53  ;;  %v1842_v43 = vmax.f32 %v1667_v50, 0.0  ;;  %v1844_v8 = vmax.f32 %v1780_v19, 0.0 }
 0x230   : > { %v1672_v9 = vpop.f32.mrf.mxu0  ;;  %v1785_v17 = vpop.f32.mrf.mxu1  ;;  %v1837_v27 = vmax.f32 %v1776_v31, 0.0  ;;  %v1867_v22 = vsub.f32 %v1803_v39, %v1835_v36  ;;  %v1868_v31 = vsub.f32 %v1804_v14, %v1836_v55  ;;  %v5506_v36 = vld [vmem:[%s6244_s1] sm:$0xff]  ;;  %v4366_v55 = vld [vmem:[%s4741_s15 + $0xb0] sm:$0xff] }
 0x231   : > { %v1673_v61 = vadd.f32 %v1672_v9, %v4926_v40  ;;  %v1786_v46 = vadd.f32 %v1785_v17, %v4926_v40  ;;  %v1843_v32 = vmax.f32 %v1669_v2, 0.0  ;;  %v1845_v20 = vmax.f32 %v1782_v16, 0.0 }
 0x232   : > { %v1674_v59 = vpop.f32.mrf.mxu0  ;;  %v1787_v51 = vpop.f32.mrf.mxu1  ;;  %v1834_v17 = vmax.f32 %v1661_v62, 0.0  ;;  %v1874_v37 = vsub.f32 %v1810_v42, %v1842_v43  ;;  %v1869_v11 = vsub.f32 %v1805_v25, %v1837_v27  ;;  %v6315_v42 = vmax.f32 %v5396_v54, 0.0  ;;  %v4370_v62 = vld [vmem:[%s4741_s15 + $0x190] sm:$0xf]  ;;  %v4372_v43 = vld [vmem:[%s4741_s15 + $0x1a0] sm:$0xf] }
 0x233   : > { %v1850_v28 = vmax.f32 %v1673_v61, 0.0  ;;  %v1852_v4 = vmax.f32 %v1786_v46, 0.0  ;;  %v1675_v58 = vadd.f32 %v1674_v59, %v4926_v40  ;;  %v1788_v30 = vadd.f32 %v1787_v51, %v4926_v40  ;;  %v4365_v27 = vld [vmem:[%s4741_s15 + $0xa8] sm:$0xff] }
 0x234   : > { %v1875_v2 = vsub.f32 %v1811_v18, %v1843_v32  ;;  %v1877_v16 = vsub.f32 %v1813_v7, %v1845_v20  ;;  %v1828_v59 = vmax.f32 %v1768_v33, 0.0  ;;  %v1876_v51 = vsub.f32 %v1812_v13, %v1844_v8  ;;  %v4368_v33 = vld [vmem:[%s4741_s15 + $0x180] sm:$0xf]  ;;  %v4361_v32 = vld [vmem:[%s4741_s15 + $0x88] sm:$0xff]  ;;  %v4363_v20 = vld [vmem:[%s4741_s15 + $0x98] sm:$0xff] }
 0x235   : > { %v1851_v34 = vmax.f32 %v1675_v58, 0.0  ;;  %v1853_v9 = vmax.f32 %v1788_v30, 0.0  ;;  %v1882_v26 = vsub.f32 %v1818_v38, %v1850_v28  ;;  %v1884_v3 = vsub.f32 %v1820_v12, %v1852_v4  ;;  %v4360_v28 = vld [vmem:[%s4741_s15 + $0x80] sm:$0xff]  ;;  %v4362_v4 = vld [vmem:[%s4741_s15 + $0x90] sm:$0xff] }
 0x236   : > { %v1866_v60 = vsub.f32 %v1802_v5, %v1834_v17  ;;  %v1859_v38 = vsub.f32 %v1795_v1, %v1827_v49  ;;  %v6314_v18 = vmax.f32 %v5408_v57, 0.0  ;;  %v1907_v12 = vand.u32 2147483647, %v1875_v2  ;;  %v4373_v49 = vld [vmem:[%s4741_s15 + $0x1a8] sm:$0xf]  ;;  %v4364_v17 = vld [vmem:[%s4741_s15 + $0xa0] sm:$0xff] }
 0x237   : > { %v1883_v61 = vsub.f32 %v1819_v23, %v1851_v34  ;;  %v1885_v46 = vsub.f32 %v1821_v41, %v1853_v9  ;;  %v1914_v58 = vand.u32 2147483647, %v1882_v26  ;;  %v1916_v30 = vand.u32 2147483647, %v1884_v3  ;;  %v4369_v41 = vld [vmem:[%s4741_s15 + $0x188] sm:$0xf] }
 0x238   : > { %v1861_v7 = vsub.f32 %v6314_v18, %v1829_v63  ;;  %v1909_v23 = vand.u32 2147483647, %v1877_v16  ;;  %v1858_v39 = vsub.f32 %v6315_v42, %v1826_v47  ;;  %v6316_v25 = vmax.f32 %v5400_v15, 0.0  ;;  %v4375_v63 = vld [vmem:[%s4741_s15 + $0x1b8] sm:$0xf]  ;;  %v5523_v9 = vld [vmem:[%s6244_s1 + $0x8] sm:$0xff] }
 0x239   : > { %v1915_v50 = vand.u32 2147483647, %v1883_v61  ;;  %v1917_v19 = vand.u32 2147483647, %v1885_v46  ;;  %v1906_v5 = vand.u32 2147483647, %v1874_v37 }
 0x23a   : > { %v1860_v13 = vsub.f32 %v6316_v25, %v1828_v59  ;;  %v1908_v14 = vand.u32 2147483647, %v1876_v51  ;;  %v1899_v26 = vand.u32 2147483647, %v1867_v22  ;;  %v1901_v6 = vand.u32 2147483647, %v1869_v11 }
 0x23b   : > { %2084 = vmatprep.subr.mxu0 %v1915_v50  ;;  %2155 = vmatprep.subr.mxu1 %v1917_v19  ;;  %v1898_v57 = vand.u32 2147483647, %v1866_v60  ;;  %v1900_v1 = vand.u32 2147483647, %v1868_v31  ;;  %v1891_v54 = vand.u32 2147483647, %v1859_v38 }
 0x23c   : > { %2085 = vmatpush1.msra.mxu0 %v1914_v58  ;;  %2156 = vmatpush1.msra.mxu1 %v1916_v30  ;;  %v1893_v47 = vand.u32 2147483647, %v1861_v7  ;;  %v1890_v15 = vand.u32 2147483647, %v1858_v39  ;;  %v1892_v37 = vand.u32 2147483647, %v1860_v13 }
 0x23d   : > { %2086 = vmatprep.subr.mxu0 %v1907_v12  ;;  %2157 = vmatprep.subr.mxu1 %v1909_v23  ;;  %v4374_v8 = vld [vmem:[%s4741_s15 + $0x1b0] sm:$0xf]  ;;  %v4367_v34 = vld [vmem:[%s4741_s15 + $0xb8] sm:$0xff]  ;;  %v5558_v16 = vld [vmem:[%s6244_s1 + $0x20] sm:$0xff] }
 0x23e   : > { %2087 = vmatpush1.msra.mxu0 %v1906_v5  ;;  %2158 = vmatpush1.msra.mxu1 %v1908_v14  ;;  %v5536_v3 = vld [vmem:[%s6244_s1 + $0x10] sm:$0xff]  ;;  %v5547_v2 = vld [vmem:[%s6244_s1 + $0x18] sm:$0xff]  ;;  %6319 = vst [vmem:[#allocation10_spill] sm:$0xff] %v5558_v16  ;;  %v5569_v61 = vld [vmem:[%s6244_s1 + $0x28] sm:$0xff] }
 0x23f   : > { %2088 = vmatprep.subr.mxu0 %v1899_v26  ;;  %2159 = vmatprep.subr.mxu1 %v1901_v6  ;;  %6317 = vst [vmem:[#allocation7_spill] sm:$0xff] %v5536_v3  ;;  %6318 = vst [vmem:[#allocation8_spill] sm:$0xff] %v5547_v2  ;;  %v5580_v46 = vld [vmem:[%s6244_s1 + $0x30] sm:$0xff]  ;;  %v5591_v59 = vld [vmem:[%s6244_s1 + $0x38] sm:$0xff] }
 0x240   : > { %2089 = vmatpush1.msra.mxu0 %v1898_v57  ;;  %2160 = vmatpush1.msra.mxu1 %v1900_v1  ;;  %6320 = vst [vmem:[#allocation9_spill] sm:$0xff] %v5569_v61  ;;  %6321 = vst [vmem:[#allocation11_spill] sm:$0xff] %v5580_v46 }
 0x241   : > { %2090 = vmatprep.subr.mxu0 %v1891_v54  ;;  %2161 = vmatprep.subr.mxu1 %v1893_v47  ;;  %6322 = vst [vmem:[#allocation12_spill] sm:$0xff] %v5591_v59 }
 0x242   : > { %2091 = vmatpush1.msra.mxu0 %v1890_v15  ;;  %2162 = vmatpush1.msra.mxu1 %v1892_v37 }
 0x243   : > { %4356 = vmatmul.mubr.msk.f32.vlgmr.msra.gmra.mxu0 %vm963_vm2, %v5483_v10  ;;  %4357 = vmatmul.mubr.msk.f32.vlgmr.msra.gmra.mxu1 %vm963_vm2, %v5483_v10 }
 0x244   : > { %4376 = vmatprep.subr.msk.mxu0 %vm353_vm0, %v4369_v41  ;;  %4386 = vmatprep.subr.msk.mxu1 %vm353_vm0, %v4371_v52 }
 0x245   : > { %4377 = vmatpush1.msk.msra.mxu0 %vm353_vm0, %v4368_v33  ;;  %4387 = vmatpush1.msk.msra.mxu1 %vm353_vm0, %v4370_v62 }
 0x246   : > { %2320 = vmatprep.subr.mxu0 %v4361_v32  ;;  %2433 = vmatprep.subr.mxu1 %v4363_v20 }
 0x247   : > { %2321 = vmatpush1.msra.mxu0 %v4360_v28  ;;  %2354 = vmatprep.mubr.f32.mxu0 %v6295_v24 }
 0x248   : > { %2434 = vmatpush1.msra.mxu1 %v4362_v4  ;;  %2467 = vmatprep.mubr.f32.mxu1 %v6295_v24 }
 0x249   : > { %4378 = vmatmul.mubr.msk.f32.vlgmr.msra.gmra.mxu0 %vm328_vm1, %v5506_v36  ;;  %4388 = vmatmul.mubr.msk.f32.vlgmr.msra.gmra.mxu1 %vm328_vm1, %v5506_v36 }
 0x24a   : > { %4396 = vmatprep.subr.msk.mxu0 %vm353_vm0, %v4373_v49  ;;  %4406 = vmatprep.subr.msk.mxu1 %vm353_vm0, %v4375_v63 }
 0x24b   : > { %4397 = vmatpush1.msk.msra.mxu0 %vm353_vm0, %v4372_v43  ;;  %4407 = vmatpush1.msk.msra.mxu1 %vm353_vm0, %v4374_v8 }
 0x24c   : > { %2360 = vmatprep.mubr.f32.mxu0 %v6295_v24  ;;  %2473 = vmatprep.mubr.f32.mxu1 %v6295_v24 }
 0x24d   : > { %4379 = vmatmul.mubr.msk.f32.gmra.mxu0 %vm328_vm1, %v5523_v9  ;;  %4389 = vmatmul.mubr.msk.f32.gmra.mxu1 %vm328_vm1, %v5523_v9 }
 0x24e   : > { %2366 = vmatprep.mubr.f32.mxu0 %v6295_v24  ;;  %2479 = vmatprep.mubr.f32.mxu1 %v6295_v24 }
 0x24f   : > { %2546 = vmatprep.subr.mxu0 %v4365_v27  ;;  %2659 = vmatprep.subr.mxu1 %v4367_v34 }
 0x250   : > { %2547 = vmatpush1.msra.mxu0 %v4364_v17  ;;  %2660 = vmatpush1.msra.mxu1 %v4366_v55 }
 0x251   : > { %4380 = vmatmul.mubr.msk.f32.gmra.mxu0 %vm328_vm1, %v5536_v3  ;;  %4390 = vmatmul.mubr.msk.f32.gmra.mxu1 %vm328_vm1, %v5536_v3 }
 0x252   : > { %2372 = vmatprep.mubr.f32.mxu0 %v6295_v24  ;;  %2485 = vmatprep.mubr.f32.mxu1 %v6295_v24 }
 0x255   : > { %4381 = vmatmul.mubr.msk.f32.gmra.mxu0 %vm328_vm1, %v5547_v2  ;;  %4391 = vmatmul.mubr.msk.f32.gmra.mxu1 %vm328_vm1, %v5547_v2 }
 0x256   : > { %2378 = vmatprep.mubr.f32.mxu0 %v6295_v24  ;;  %2491 = vmatprep.mubr.f32.mxu1 %v6295_v24 }
 0x259   : > { %4382 = vmatmul.mubr.msk.f32.gmra.mxu0 %vm328_vm1, %v5558_v16  ;;  %4392 = vmatmul.mubr.msk.f32.gmra.mxu1 %vm328_vm1, %v5558_v16 }
 0x25a   : > { %2384 = vmatprep.mubr.f32.mxu0 %v6295_v24  ;;  %2497 = vmatprep.mubr.f32.mxu1 %v6295_v24 }
 0x25d   : > { %4383 = vmatmul.mubr.msk.f32.gmra.mxu0 %vm328_vm1, %v5569_v61  ;;  %4393 = vmatmul.mubr.msk.f32.gmra.mxu1 %vm328_vm1, %v5569_v61 }
 0x25e   : > { %2390 = vmatprep.mubr.f32.mxu0 %v6295_v24  ;;  %2503 = vmatprep.mubr.f32.mxu1 %v6295_v24 }
 0x261   : > { %4384 = vmatmul.mubr.msk.f32.gmra.mxu0 %vm328_vm1, %v5580_v46  ;;  %4394 = vmatmul.mubr.msk.f32.gmra.mxu1 %vm328_vm1, %v5580_v46 }
 0x262   : > { %2396 = vmatprep.mubr.f32.mxu0 %v6295_v24  ;;  %2509 = vmatprep.mubr.f32.mxu1 %v6295_v24 }
 0x265   : > { %4385 = vmatmul.mubr.msk.f32.gmra.mxu0 %vm328_vm1, %v5591_v59  ;;  %4395 = vmatmul.mubr.msk.f32.gmra.mxu1 %vm328_vm1, %v5591_v59 }
 0x266   : > { %2580 = vmatprep.mubr.f32.mxu0 %v6295_v24  ;;  %2693 = vmatprep.mubr.f32.mxu1 %v6295_v24 }
 0x269   : > { %4398 = vmatmul.mubr.msk.f32.vlgmr.msra.gmra.mxu0 %vm328_vm1, %v5506_v36  ;;  %4408 = vmatmul.mubr.msk.f32.vlgmr.msra.gmra.mxu1 %vm328_vm1, %v5506_v36 }
 0x26a   : > { %2586 = vmatprep.mubr.f32.mxu0 %v6295_v24  ;;  %2699 = vmatprep.mubr.f32.mxu1 %v6295_v24 }
 0x26d   : > { %4399 = vmatmul.mubr.msk.f32.gmra.mxu0 %vm328_vm1, %v5523_v9  ;;  %4409 = vmatmul.mubr.msk.f32.gmra.mxu1 %vm328_vm1, %v5523_v9 }
 0x26e   : > { %2592 = vmatprep.mubr.f32.mxu0 %v6295_v24  ;;  %2705 = vmatprep.mubr.f32.mxu1 %v6295_v24 }
 0x271   : > { %4400 = vmatmul.mubr.msk.f32.gmra.mxu0 %vm328_vm1, %v5536_v3  ;;  %4410 = vmatmul.mubr.msk.f32.gmra.mxu1 %vm328_vm1, %v5536_v3 }
 0x272   : > { %2598 = vmatprep.mubr.f32.mxu0 %v6295_v24  ;;  %2711 = vmatprep.mubr.f32.mxu1 %v6295_v24 }
 0x275   : > { %4401 = vmatmul.mubr.msk.f32.gmra.mxu0 %vm328_vm1, %v5547_v2  ;;  %4411 = vmatmul.mubr.msk.f32.gmra.mxu1 %vm328_vm1, %v5547_v2 }
 0x276   : > { %2604 = vmatprep.mubr.f32.mxu0 %v6295_v24  ;;  %2717 = vmatprep.mubr.f32.mxu1 %v6295_v24 }
 0x279   : > { %4402 = vmatmul.mubr.msk.f32.gmra.mxu0 %vm328_vm1, %v5558_v16  ;;  %4412 = vmatmul.mubr.msk.f32.gmra.mxu1 %vm328_vm1, %v5558_v16 }
 0x27a   : > { %2610 = vmatprep.mubr.f32.mxu0 %v6295_v24  ;;  %2723 = vmatprep.mubr.f32.mxu1 %v6295_v24 }
 0x27d   : > { %4403 = vmatmul.mubr.msk.f32.gmra.mxu0 %vm328_vm1, %v5569_v61  ;;  %4413 = vmatmul.mubr.msk.f32.gmra.mxu1 %vm328_vm1, %v5569_v61 }
 0x27e   : > { %2616 = vmatprep.mubr.f32.mxu0 %v6295_v24  ;;  %2729 = vmatprep.mubr.f32.mxu1 %v6295_v24 }
 0x281   : > { %4404 = vmatmul.mubr.msk.f32.gmra.mxu0 %vm328_vm1, %v5580_v46  ;;  %4414 = vmatmul.mubr.msk.f32.gmra.mxu1 %vm328_vm1, %v5580_v46 }
 0x282   : > { %2622 = vmatprep.mubr.f32.mxu0 %v6295_v24  ;;  %2735 = vmatprep.mubr.f32.mxu1 %v6295_v24 }
 0x285   : > { %4405 = vmatmul.mubr.msk.f32.gmra.mxu0 %vm328_vm1, %v5591_v59  ;;  %4415 = vmatmul.mubr.msk.f32.gmra.mxu1 %vm328_vm1, %v5591_v59 }
 0x286   : > { %2934 = vmatprep.mubr.f32.mxu0 %v6295_v24  ;;  %3005 = vmatprep.mubr.f32.mxu1 %v6295_v24 }
 0x2e3   : > { %v1984_v51 = vpop.f32.mrf.mxu0  ;;  %v2055_v22 = vpop.f32.mrf.mxu1 }
 0x2e4   : > { %v1985_v19 = vadd.f32 %v1984_v51, %v5267_v44  ;;  %v2056_v60 = vadd.f32 %v2055_v22, %v5267_v44 }
 0x2e5   : > { %v1986_v11 = vpop.f32.mrf.mxu0  ;;  %v2057_v50 = vpop.f32.mrf.mxu1 }
 0x2e6   : > { %v1987_v31 = vadd.f32 %v1986_v11, %v5267_v44  ;;  %v2058_v58 = vadd.f32 %v2057_v50, %v5267_v44 }
 0x2e8   : > { %v2210_v30 = vcombine.low %v1985_v19, %v1987_v31  ;;  %v2211_v38 = vcombine.low %v2056_v60, %v2058_v58 }
 0x2ea   : > { %v2218_v18 = vrot.slane %v2210_v30, %v5269_v21  ;;  %v2225_v7 = vrot.slane %v2211_v38, %v5269_v21 }
 0x2ec   : > { %v2226_v12 = vcombine.low %v2218_v18, %v2225_v7 }
 0x2ee   : > { %4358 = vst [vmem:[%s5280_s7 + $0x10] sm:$0xff] %v2226_v12 }
 0x303   : > { %v2126_v23 = vpop.f32.mrf.mxu0  ;;  %v2197_v42 = vpop.f32.mrf.mxu1 }
 0x304   : > { %v2127_v13 = vadd.f32 %v2126_v23, %v5267_v44  ;;  %v2198_v5 = vadd.f32 %v2197_v42, %v5267_v44 }
 0x305   : > { %v2128_v39 = vpop.f32.mrf.mxu0  ;;  %v2199_v25 = vpop.f32.mrf.mxu1 }
 0x306   : > { %v2129_v14 = vadd.f32 %v2128_v39, %v5267_v44  ;;  %v2200_v26 = vadd.f32 %v2199_v25, %v5267_v44 }
 0x308   : > { %v2227_v6 = vcombine.low %v2127_v13, %v2129_v14  ;;  %v2228_v57 = vcombine.low %v2198_v5, %v2200_v26 }
 0x309   : > { %v2356_v1 = vpop.f32.mrf.mxu0  ;;  %v2469_v54 = vpop.f32.mrf.mxu1 }
 0x30a   : > { %v2235_v47 = vrot.slane %v2227_v6, %v5269_v21  ;;  %v2242_v15 = vrot.slane %v2228_v57, %v5269_v21  ;;  %v5662_v11 = vadd.f32 %v2356_v1, %v4934_v56  ;;  %v5665_v50 = vadd.f32 %v2469_v54, %v4934_v56 }
 0x30b   : > { %v2358_v37 = vpop.f32.mrf.mxu0  ;;  %v2471_v41 = vpop.f32.mrf.mxu1 }
 0x30c   : > { %v2243_v52 = vcombine.low %v2235_v47, %v2242_v15  ;;  %v5668_v19 = vadd.f32 %v2358_v37, %v4934_v56  ;;  %v5671_v60 = vadd.f32 %v2471_v41, %v4934_v56 }
 0x30d   : > { %v2362_v33 = vpop.f32.mrf.mxu0  ;;  %v2475_v62 = vpop.f32.mrf.mxu1 }
 0x30e   : > { %4359 = vst [vmem:[%s5280_s7 + $0x18] sm:$0xff] %v2243_v52  ;;  %v5674_v30 = vadd.f32 %v2362_v33, %v4930_v48  ;;  %v5677_v38 = vadd.f32 %v2475_v62, %v4930_v48 }
 0x30f   : > { %v2364_v32 = vpop.f32.mrf.mxu0  ;;  %v2477_v20 = vpop.f32.mrf.mxu1 }
 0x310   : > { %v5680_v18 = vadd.f32 %v2364_v32, %v4930_v48  ;;  %v5683_v7 = vadd.f32 %v2477_v20, %v4930_v48 }
 0x311   : > { %v2368_v28 = vpop.f32.mrf.mxu0  ;;  %v2481_v4 = vpop.f32.mrf.mxu1 }
 0x312   : > { %v5686_v12 = vadd.f32 %v2368_v28, %v4928_v45  ;;  %v5689_v23 = vadd.f32 %v2481_v4, %v4928_v45  ;;  %v2751_v33 = vmax.f32 %v5680_v18, 0.0  ;;  %v2753_v62 = vmax.f32 %v5683_v7, 0.0 }
 0x313   : > { %v2370_v49 = vpop.f32.mrf.mxu0  ;;  %v2483_v63 = vpop.f32.mrf.mxu1 }
 0x314   : > { %v5692_v42 = vadd.f32 %v2370_v49, %v4928_v45  ;;  %v5695_v39 = vadd.f32 %v2483_v63, %v4928_v45  ;;  %v2758_v32 = vmax.f32 %v5686_v12, 0.0  ;;  %v2760_v20 = vmax.f32 %v5689_v23, 0.0 }
 0x315   : > { %v2374_v43 = vpop.f32.mrf.mxu0  ;;  %v2487_v8 = vpop.f32.mrf.mxu1 }
 0x316   : > { %v2375_v26 = vadd.f32 %v2374_v43, %v4924_v35  ;;  %v2488_v6 = vadd.f32 %v2487_v8, %v4924_v35  ;;  %v2759_v28 = vmax.f32 %v5692_v42, 0.0  ;;  %v2761_v4 = vmax.f32 %v5695_v39, 0.0 }
 0x317   : > { %v2376_v27 = vpop.f32.mrf.mxu0  ;;  %v2489_v34 = vpop.f32.mrf.mxu1 }
 0x318   : > { %v2377_v54 = vadd.f32 %v2376_v27, %v4924_v35  ;;  %v2490_v47 = vadd.f32 %v2489_v34, %v4924_v35  ;;  %v2766_v43 = vmax.f32 %v2375_v26, 0.0  ;;  %v2768_v8 = vmax.f32 %v2488_v6, 0.0 }
 0x319   : > { %v2380_v17 = vpop.f32.mrf.mxu0  ;;  %v2493_v55 = vpop.f32.mrf.mxu1 }
 0x31a   : > { %v2767_v14 = vmax.f32 %v2377_v54, 0.0  ;;  %v2769_v18 = vmax.f32 %v2490_v47, 0.0  ;;  %v5716_v7 = vadd.f32 %v2380_v17, %v6306_v29  ;;  %v5719_v12 = vadd.f32 %v2493_v55, %v6306_v29 }
 0x31b   : > { %v2382_v51 = vpop.f32.mrf.mxu0  ;;  %v2495_v22 = vpop.f32.mrf.mxu1 }
 0x31c   : > { %v2383_v39 = vadd.f32 %v2382_v51, %v6306_v29  ;;  %v2496_v5 = vadd.f32 %v2495_v22, %v6306_v29 }
 0x31d   : > { %v2386_v31 = vpop.f32.mrf.mxu0  ;;  %v2499_v58 = vpop.f32.mrf.mxu1 }
 0x31e   : > { %v2387_v1 = vadd.f32 %v2386_v31, %v6307_v0  ;;  %v2500_v51 = vadd.f32 %v2499_v58, %v6307_v0 }
 0x31f   : > { %v2388_v25 = vpop.f32.mrf.mxu0  ;;  %v2501_v13 = vpop.f32.mrf.mxu1 }
 0x320   : > { %v2502_v54 = vadd.f32 %v2501_v13, %v6307_v0 }
 0x321   : > { %v2392_v15 = vpop.f32.mrf.mxu0  ;;  %v2505_v37 = vpop.f32.mrf.mxu1 }
 0x322   : > { %v2393_v26 = vadd.f32 %v2392_v15, %v4932_v53  ;;  %v2506_v6 = vadd.f32 %v2505_v37, %v4932_v53  ;;  %v2785_v31 = vmax.f32 %v2502_v54, 0.0 }
 0x323   : > { %v2394_v49 = vpop.f32.mrf.mxu0  ;;  %v2507_v63 = vpop.f32.mrf.mxu1 }
 0x324   : > { %v2395_v27 = vadd.f32 %v2394_v49, %v4932_v53  ;;  %v2508_v34 = vadd.f32 %v2507_v63, %v4932_v53  ;;  %v2389_v49 = vadd.f32 %v2388_v25, %v6307_v0  ;;  %v2790_v21 = vmax.f32 %v2393_v26, 0.0 }
 0x325   : > { %v2398_v23 = vpop.f32.mrf.mxu0  ;;  %v2511_v42 = vpop.f32.mrf.mxu1  ;;  %v2792_v44 = vmax.f32 %v2506_v6, 0.0  ;;  %v2774_v26 = vmax.f32 %v5716_v7, 0.0  ;;  %v2776_v6 = vmax.f32 %v5719_v12, 0.0 }
 0x326   : > { %v2399_v17 = vadd.f32 %v2398_v23, %v4926_v40  ;;  %v2512_v47 = vadd.f32 %v2511_v42, %v4926_v40  ;;  %v2791_v57 = vmax.f32 %v2395_v27, 0.0  ;;  %v2793_v22 = vmax.f32 %v2508_v34, 0.0 }
 0x327   : > { %v2400_v55 = vpop.f32.mrf.mxu0  ;;  %v2513_v63 = vpop.f32.mrf.mxu1  ;;  %v2775_v23 = vmax.f32 %v2383_v39, 0.0  ;;  %v2777_v42 = vmax.f32 %v2496_v5, 0.0  ;;  %v2783_v59 = vmax.f32 %v2389_v49, 0.0  ;;  %v2822_v49 = vsub.f32 %v2758_v32, %v2790_v21 }
 0x328   : > { %v2798_v52 = vmax.f32 %v2399_v17, 0.0  ;;  %v2800_v15 = vmax.f32 %v2512_v47, 0.0  ;;  %v2401_v37 = vadd.f32 %v2400_v55, %v4926_v40  ;;  %v2514_v25 = vadd.f32 %v2513_v63, %v4926_v40 }
 0x329   : > { %v5733_v41 = vpop.f32.mrf.mxu0  ;;  %v5735_v13 = vpop.f32.mrf.mxu1  ;;  %v2782_v17 = vmax.f32 %v2387_v1, 0.0  ;;  %v2784_v47 = vmax.f32 %v2500_v51, 0.0  ;;  %v2823_v61 = vsub.f32 %v2759_v28, %v2791_v57  ;;  %v2825_v16 = vsub.f32 %v2761_v4, %v2793_v22 }
 0x32a   : > { %v2799_v46 = vmax.f32 %v2401_v37, 0.0  ;;  %v2801_v58 = vmax.f32 %v2514_v25, 0.0  ;;  %v2830_v55 = vsub.f32 %v2766_v43, %v2798_v52  ;;  %v2832_v63 = vsub.f32 %v2768_v8, %v2800_v15 }
 0x32b   : > { %v5737_v27 = vpop.f32.mrf.mxu0  ;;  %v5739_v34 = vpop.f32.mrf.mxu1  ;;  %v2824_v54 = vsub.f32 %v2760_v20, %v2792_v44  ;;  %v2815_v37 = vsub.f32 %v2751_v33, %v2783_v59  ;;  %v2817_v25 = vsub.f32 %v2753_v62, %v2785_v31  ;;  %v6323_v57 = vmax.f32 %v5674_v30, 0.0 }
 0x32c   : > { %v2831_v2 = vsub.f32 %v2767_v14, %v2799_v46  ;;  %v2833_v3 = vsub.f32 %v2769_v18, %v2801_v58  ;;  %v6324_v14 = vmax.f32 %v5677_v38, 0.0  ;;  %v2862_v4 = vand.u32 2147483647, %v2830_v55 }
 0x32d   : > { %v5741_v39 = vpop.f32.mrf.mxu0  ;;  %v5743_v5 = vpop.f32.mrf.mxu1  ;;  %v2814_v46 = vsub.f32 %v6323_v57, %v2782_v17  ;;  %v2864_v8 = vand.u32 2147483647, %v2832_v63  ;;  %v6325_v18 = vmax.f32 %v5668_v19, 0.0  ;;  %v6326_v21 = vmax.f32 %v5671_v60, 0.0 }
 0x32e   : > { %v2863_v1 = vand.u32 2147483647, %v2831_v2  ;;  %v2865_v51 = vand.u32 2147483647, %v2833_v3  ;;  %v2816_v28 = vsub.f32 %v6324_v14, %v2784_v47  ;;  %v2855_v59 = vand.u32 2147483647, %v2823_v61 }
 0x32f   : > { %v2590_v52 = vpop.f32.mrf.mxu0  ;;  %v2703_v43 = vpop.f32.mrf.mxu1  ;;  %v2807_v7 = vsub.f32 %v6325_v18, %v2775_v23  ;;  %v2809_v44 = vsub.f32 %v6326_v21, %v2777_v42  ;;  %v2857_v33 = vand.u32 2147483647, %v2825_v16  ;;  %v6327_v30 = vmax.f32 %v5662_v11, 0.0 }
 0x330   : > { %2894 = vmatprep.subr.mxu0 %v2863_v1  ;;  %2965 = vmatprep.subr.mxu1 %v2865_v51  ;;  %v6328_v38 = vmax.f32 %v5665_v50, 0.0  ;;  %v2854_v20 = vand.u32 2147483647, %v2822_v49  ;;  %v2856_v12 = vand.u32 2147483647, %v2824_v54  ;;  %v5767_v49 = vadd.f32 %v5733_v41, %v4934_v56 }
 0x331   : > { %v2594_v3 = vpop.f32.mrf.mxu0  ;;  %v2707_v2 = vpop.f32.mrf.mxu1  ;;  %v2806_v62 = vsub.f32 %v6327_v30, %v2774_v26  ;;  %2895 = vmatpush1.msra.mxu0 %v2862_v4  ;;  %2966 = vmatpush1.msra.mxu1 %v2864_v8  ;;  %v2847_v19 = vand.u32 2147483647, %v2815_v37  ;;  %v2849_v22 = vand.u32 2147483647, %v2817_v25  ;;  %v2846_v60 = vand.u32 2147483647, %v2814_v46 }
 0x332   : > { %v2808_v32 = vsub.f32 %v6328_v38, %v2776_v6  ;;  %2896 = vmatprep.subr.mxu0 %v2855_v59  ;;  %2967 = vmatprep.subr.mxu1 %v2857_v33  ;;  %v2848_v15 = vand.u32 2147483647, %v2816_v28  ;;  %v2839_v23 = vand.u32 2147483647, %v2807_v7  ;;  %v2841_v11 = vand.u32 2147483647, %v2809_v44 }
 0x333   : > { %v2596_v61 = vpop.f32.mrf.mxu0  ;;  %v2709_v16 = vpop.f32.mrf.mxu1  ;;  %2897 = vmatpush1.msra.mxu0 %v2854_v20  ;;  %2968 = vmatpush1.msra.mxu1 %v2856_v12  ;;  %v2838_v31 = vand.u32 2147483647, %v2806_v62  ;;  %v5771_v54 = vadd.f32 %v5735_v13, %v4934_v56  ;;  %v5775_v37 = vadd.f32 %v5737_v27, %v4934_v56  ;;  %v5779_v25 = vadd.f32 %v5739_v34, %v4934_v56 }
 0x334   : > { %2898 = vmatprep.subr.mxu0 %v2847_v19  ;;  %2969 = vmatprep.subr.mxu1 %v2849_v22  ;;  %v2840_v58 = vand.u32 2147483647, %v2808_v32  ;;  %v5783_v57 = vadd.f32 %v5741_v39, %v4930_v48  ;;  %v5787_v41 = vadd.f32 %v5743_v5, %v4930_v48  ;;  %v5790_v13 = vadd.f32 %v2590_v52, %v4930_v48 }
 0x335   : > { %v2600_v50 = vpop.f32.mrf.mxu0  ;;  %v2713_v42 = vpop.f32.mrf.mxu1  ;;  %2899 = vmatpush1.msra.mxu0 %v2846_v60  ;;  %2970 = vmatpush1.msra.mxu1 %v2848_v15  ;;  %v5793_v27 = vadd.f32 %v2703_v43, %v4930_v48  ;;  %v5796_v46 = vadd.f32 %v2594_v3, %v4928_v45  ;;  %v5799_v34 = vadd.f32 %v2707_v2, %v4928_v45 }
 0x336   : > { %2900 = vmatprep.subr.mxu0 %v2839_v23  ;;  %2971 = vmatprep.subr.mxu1 %v2841_v11  ;;  %v5802_v14 = vadd.f32 %v2596_v61, %v4928_v45  ;;  %v5805_v39 = vadd.f32 %v2709_v16, %v4928_v45  ;;  %v2601_v43 = vadd.f32 %v2600_v50, %v4924_v35  ;;  %v2754_v3 = vmax.f32 %v5783_v57, 0.0 }
 0x337   : > { %v2602_v17 = vpop.f32.mrf.mxu0  ;;  %v2715_v47 = vpop.f32.mrf.mxu1  ;;  %2901 = vmatpush1.msra.mxu0 %v2838_v31  ;;  %2972 = vmatpush1.msra.mxu1 %v2840_v58  ;;  %v2714_v8 = vadd.f32 %v2713_v42, %v4924_v35  ;;  %v2756_v2 = vmax.f32 %v5787_v41, 0.0  ;;  %v2755_v30 = vmax.f32 %v5790_v13, 0.0  ;;  %v2757_v62 = vmax.f32 %v5793_v27, 0.0 }
 0x338   : > { %4416 = vmatmul.mubr.msk.f32.vlgmr.msra.gmra.mxu0 %vm963_vm2, %v5483_v10  ;;  %4417 = vmatmul.mubr.msk.f32.vlgmr.msra.gmra.mxu1 %vm963_vm2, %v5483_v10  ;;  %v2603_v21 = vadd.f32 %v2602_v17, %v4924_v35  ;;  %v2716_v44 = vadd.f32 %v2715_v47, %v4924_v35  ;;  %v2762_v38 = vmax.f32 %v5796_v46, 0.0  ;;  %v2764_v32 = vmax.f32 %v5799_v34, 0.0 }
 0x339   : > { %v2606_v55 = vpop.f32.mrf.mxu0  ;;  %v2719_v63 = vpop.f32.mrf.mxu1  ;;  %3076 = vmatprep.mubr.f32.mxu0 %v6295_v24  ;;  %3147 = vmatprep.mubr.f32.mxu1 %v6295_v24  ;;  %v2763_v20 = vmax.f32 %v5802_v14, 0.0  ;;  %v2765_v12 = vmax.f32 %v5805_v39, 0.0  ;;  %v2770_v61 = vmax.f32 %v2601_v43, 0.0  ;;  %v2772_v16 = vmax.f32 %v2714_v8, 0.0 }
 0x33a   : > { %v2771_v23 = vmax.f32 %v2603_v21, 0.0  ;;  %v2773_v11 = vmax.f32 %v2716_v44, 0.0  ;;  %v2607_v50 = vadd.f32 %v2606_v55, %v6306_v29  ;;  %v2720_v42 = vadd.f32 %v2719_v63, %v6306_v29 }
 0x33b   : > { %v2608_v26 = vpop.f32.mrf.mxu0  ;;  %v2721_v6 = vpop.f32.mrf.mxu1 }
 0x33c   : > { %v2609_v17 = vadd.f32 %v2608_v26, %v6306_v29  ;;  %v2722_v47 = vadd.f32 %v2721_v6, %v6306_v29  ;;  %v2778_v7 = vmax.f32 %v2607_v50, 0.0  ;;  %v4433_v50 = vld [vmem:[%s4741_s15 + $0x1d8] sm:$0xf] }
 0x33d   : > { %v2612_v1 = vpop.f32.mrf.mxu0  ;;  %v2725_v51 = vpop.f32.mrf.mxu1 }
 0x33e   : > { %v2613_v14 = vadd.f32 %v2612_v1, %v6307_v0  ;;  %v2726_v26 = vadd.f32 %v2725_v51, %v6307_v0  ;;  %v2779_v44 = vmax.f32 %v2609_v17, 0.0 }
 0x33f   : > { %v2614_v5 = vpop.f32.mrf.mxu0  ;;  %v2727_v28 = vpop.f32.mrf.mxu1 }
 0x340   : > { %v2615_v13 = vadd.f32 %v2614_v5, %v6307_v0  ;;  %v2728_v27 = vadd.f32 %v2727_v28, %v6307_v0  ;;  %v2781_v28 = vmax.f32 %v2722_v47, 0.0  ;;  %v2786_v4 = vmax.f32 %v2613_v14, 0.0 }
 0x341   : > { %v2618_v59 = vpop.f32.mrf.mxu0  ;;  %v2731_v33 = vpop.f32.mrf.mxu1  ;;  %v2788_v1 = vmax.f32 %v2726_v26, 0.0  ;;  %v6329_v14 = vmax.f32 %v5775_v37, 0.0  ;;  %v4432_v26 = vld [vmem:[%s4741_s15 + $0x1d0] sm:$0xf] }
 0x342   : > { %v2619_v57 = vadd.f32 %v2618_v59, %v4932_v53  ;;  %v2732_v41 = vadd.f32 %v2731_v33, %v4932_v53 }
 0x343   : > { %v2620_v19 = vpop.f32.mrf.mxu0  ;;  %v2733_v22 = vpop.f32.mrf.mxu1 }
 0x344   : > { %v2621_v60 = vadd.f32 %v2620_v19, %v4932_v53  ;;  %v2734_v15 = vadd.f32 %v2733_v22, %v4932_v53  ;;  %v2794_v59 = vmax.f32 %v2619_v57, 0.0  ;;  %v2796_v33 = vmax.f32 %v2732_v41, 0.0 }
 0x345   : > { %v2624_v31 = vpop.f32.mrf.mxu0  ;;  %v2737_v58 = vpop.f32.mrf.mxu1  ;;  %v2787_v19 = vmax.f32 %v2615_v13, 0.0  ;;  %v2789_v22 = vmax.f32 %v2728_v27, 0.0  ;;  %v2818_v13 = vsub.f32 %v2754_v3, %v2786_v4  ;;  %v2820_v27 = vsub.f32 %v2756_v2, %v2788_v1  ;;  %v6334_v1 = vld [vmem:[#allocation8_spill] sm:$0xff] }
 0x346   : > { %v2625_v46 = vadd.f32 %v2624_v31, %v4926_v40  ;;  %v2738_v55 = vadd.f32 %v2737_v58, %v4926_v40  ;;  %v2795_v39 = vmax.f32 %v2621_v60, 0.0  ;;  %v2797_v6 = vmax.f32 %v2734_v15, 0.0 }
 0x347   : > { %v2626_v34 = vpop.f32.mrf.mxu0  ;;  %v2739_v63 = vpop.f32.mrf.mxu1  ;;  %v2826_v18 = vsub.f32 %v2762_v38, %v2794_v59  ;;  %v2819_v17 = vsub.f32 %v2755_v30, %v2787_v19  ;;  %v2821_v47 = vsub.f32 %v2757_v62, %v2789_v22  ;;  %v6331_v38 = vmax.f32 %v5767_v49, 0.0  ;;  %v4436_v59 = vld [vmem:[%s4741_s15 + $0x1f0] sm:$0xf]  ;;  %v4429_v19 = vld [vmem:[%s4741_s15 + $0xf8] sm:$0xff]  ;;  %v4426_v22 = vld [vmem:[%s4741_s15 + $0xe0] sm:$0xff] }
 0x348   : > { %v2802_v43 = vmax.f32 %v2625_v46, 0.0  ;;  %v2804_v8 = vmax.f32 %v2738_v55, 0.0  ;;  %v2627_v21 = vadd.f32 %v2626_v34, %v4926_v40  ;;  %v2740_v5 = vadd.f32 %v2739_v63, %v4926_v40 }
 0x349   : > { %v2827_v60 = vsub.f32 %v2763_v20, %v2795_v39  ;;  %v2829_v15 = vsub.f32 %v2765_v12, %v2797_v6  ;;  %v2780_v34 = vmax.f32 %v2720_v42, 0.0  ;;  %v2828_v63 = vsub.f32 %v2764_v32, %v2796_v33  ;;  %v4430_v42 = vld [vmem:[%s4741_s15 + $0x1c0] sm:$0xf]  ;;  %v4423_v39 = vld [vmem:[%s4741_s15 + $0xc8] sm:$0xff]  ;;  %v4425_v6 = vld [vmem:[%s4741_s15 + $0xd8] sm:$0xff] }
 0x34a   : > { %v2803_v31 = vmax.f32 %v2627_v21, 0.0  ;;  %v2805_v58 = vmax.f32 %v2740_v5, 0.0  ;;  %v2834_v52 = vsub.f32 %v2770_v61, %v2802_v43  ;;  %v2836_v51 = vsub.f32 %v2772_v16, %v2804_v8  ;;  %v4422_v43 = vld [vmem:[%s4741_s15 + $0xc0] sm:$0xff]  ;;  %v4424_v8 = vld [vmem:[%s4741_s15 + $0xd0] sm:$0xff]  ;;  %v4427_v33 = vld [vmem:[%s4741_s15 + $0xe8] sm:$0xff] }
 0x34b   : > { %v2811_v61 = vsub.f32 %v6329_v14, %v2779_v44  ;;  %v6330_v20 = vmax.f32 %v5779_v25, 0.0  ;;  %v2859_v16 = vand.u32 2147483647, %v2827_v60  ;;  %v2810_v30 = vsub.f32 %v6331_v38, %v2778_v7  ;;  %v4437_v44 = vld [vmem:[%s4741_s15 + $0x1f8] sm:$0xf]  ;;  %v6336_v60 = vld [vmem:[#allocation9_spill] sm:$0xff] }
 0x34c   : > { %v2835_v46 = vsub.f32 %v2771_v23, %v2803_v31  ;;  %v2837_v55 = vsub.f32 %v2773_v11, %v2805_v58  ;;  %v2866_v21 = vand.u32 2147483647, %v2834_v52  ;;  %v2868_v5 = vand.u32 2147483647, %v2836_v51  ;;  %v4431_v11 = vld [vmem:[%s4741_s15 + $0x1c8] sm:$0xf] }
 0x34d   : > { %v2813_v12 = vsub.f32 %v6330_v20, %v2781_v28  ;;  %v2861_v23 = vand.u32 2147483647, %v2829_v15  ;;  %v6332_v62 = vmax.f32 %v5771_v54, 0.0  ;;  %v2858_v4 = vand.u32 2147483647, %v2826_v18  ;;  %v4428_v31 = vld [vmem:[%s4741_s15 + $0xf0] sm:$0xff] }
 0x34e   : > { %v2867_v57 = vand.u32 2147483647, %v2835_v46  ;;  %v2869_v41 = vand.u32 2147483647, %v2837_v55  ;;  %v2860_v3 = vand.u32 2147483647, %v2828_v63 }
 0x34f   : > { %v2812_v32 = vsub.f32 %v6332_v62, %v2780_v34  ;;  %v2851_v52 = vand.u32 2147483647, %v2819_v17  ;;  %v2853_v37 = vand.u32 2147483647, %v2821_v47  ;;  %v2850_v25 = vand.u32 2147483647, %v2818_v13 }
 0x350   : > { %3036 = vmatprep.subr.mxu0 %v2867_v57  ;;  %3107 = vmatprep.subr.mxu1 %v2869_v41  ;;  %v2852_v2 = vand.u32 2147483647, %v2820_v27  ;;  %v2843_v49 = vand.u32 2147483647, %v2811_v61  ;;  %v2845_v7 = vand.u32 2147483647, %v2813_v12 }
 0x351   : > { %3037 = vmatpush1.msra.mxu0 %v2866_v21  ;;  %3108 = vmatpush1.msra.mxu1 %v2868_v5  ;;  %v2842_v54 = vand.u32 2147483647, %v2810_v30  ;;  %v2844_v18 = vand.u32 2147483647, %v2812_v32  ;;  %v4434_v28 = vld [vmem:[%s4741_s15 + $0x1e0] sm:$0xf] }
 0x352   : > { %3038 = vmatprep.subr.mxu0 %v2859_v16  ;;  %3109 = vmatprep.subr.mxu1 %v2861_v23  ;;  %v6333_v58 = vld [vmem:[#allocation7_spill] sm:$0xff]  ;;  %v6335_v51 = vld [vmem:[#allocation10_spill] sm:$0xff]  ;;  %v6338_v46 = vld [vmem:[#allocation12_spill] sm:$0xff] }
 0x353   : > { %3039 = vmatpush1.msra.mxu0 %v2858_v4  ;;  %3110 = vmatpush1.msra.mxu1 %v2860_v3  ;;  %v6337_v15 = vld [vmem:[#allocation11_spill] sm:$0xff]  ;;  %v6339_v63 = vld [vmem:[#allocation5_spill] sm:$0xff]  ;;  %v6340_v21 = vld [vmem:[#allocation6_spill] sm:$0xff] }
 0x354   : > { %3040 = vmatprep.subr.mxu0 %v2851_v52  ;;  %3111 = vmatprep.subr.mxu1 %v2853_v37 }
 0x355   : > { %3041 = vmatpush1.msra.mxu0 %v2850_v25  ;;  %3112 = vmatpush1.msra.mxu1 %v2852_v2 }
 0x356   : > { %3042 = vmatprep.subr.mxu0 %v2843_v49  ;;  %3113 = vmatprep.subr.mxu1 %v2845_v7 }
 0x357   : > { %3043 = vmatpush1.msra.mxu0 %v2842_v54  ;;  %3114 = vmatpush1.msra.mxu1 %v2844_v18 }
 0x358   : > { %4418 = vmatmul.mubr.msk.f32.vlgmr.msra.gmra.mxu0 %vm963_vm2, %v5483_v10  ;;  %4419 = vmatmul.mubr.msk.f32.vlgmr.msra.gmra.mxu1 %vm963_vm2, %v5483_v10  ;;  %v4435_v10 = vld [vmem:[%s4741_s15 + $0x1e8] sm:$0xf] }
 0x359   : > { %4438 = vmatprep.subr.msk.mxu0 %vm353_vm0, %v4431_v11  ;;  %4448 = vmatprep.subr.msk.mxu1 %vm353_vm0, %v4433_v50 }
 0x35a   : > { %4439 = vmatpush1.msk.msra.mxu0 %vm353_vm0, %v4430_v42  ;;  %4449 = vmatpush1.msk.msra.mxu1 %vm353_vm0, %v4432_v26 }
 0x35b   : > { %3272 = vmatprep.subr.mxu0 %v4423_v39  ;;  %3385 = vmatprep.subr.mxu1 %v4425_v6 }
 0x35c   : > { %3273 = vmatpush1.msra.mxu0 %v4422_v43  ;;  %3306 = vmatprep.mubr.f32.mxu0 %v6295_v24 }
 0x35d   : > { %3386 = vmatpush1.msra.mxu1 %v4424_v8  ;;  %3419 = vmatprep.mubr.f32.mxu1 %v6295_v24 }
 0x35e   : > { %4440 = vmatmul.mubr.msk.f32.vlgmr.msra.gmra.mxu0 %vm328_vm1, %v5506_v36  ;;  %4450 = vmatmul.mubr.msk.f32.vlgmr.msra.gmra.mxu1 %vm328_vm1, %v5506_v36 }
 0x35f   : > { %4458 = vmatprep.subr.msk.mxu0 %vm353_vm0, %v4435_v10  ;;  %4468 = vmatprep.subr.msk.mxu1 %vm353_vm0, %v4437_v44 }
 0x360   : > { %4459 = vmatpush1.msk.msra.mxu0 %vm353_vm0, %v4434_v28  ;;  %4469 = vmatpush1.msk.msra.mxu1 %vm353_vm0, %v4436_v59 }
 0x361   : > { %3312 = vmatprep.mubr.f32.mxu0 %v6295_v24  ;;  %3425 = vmatprep.mubr.f32.mxu1 %v6295_v24 }
 0x362   : > { %4441 = vmatmul.mubr.msk.f32.gmra.mxu0 %vm328_vm1, %v5523_v9  ;;  %4451 = vmatmul.mubr.msk.f32.gmra.mxu1 %vm328_vm1, %v5523_v9 }
 0x363   : > { %3318 = vmatprep.mubr.f32.mxu0 %v6295_v24  ;;  %3431 = vmatprep.mubr.f32.mxu1 %v6295_v24 }
 0x364   : > { %3498 = vmatprep.subr.mxu0 %v4427_v33  ;;  %3611 = vmatprep.subr.mxu1 %v4429_v19 }
 0x365   : > { %3499 = vmatpush1.msra.mxu0 %v4426_v22  ;;  %3612 = vmatpush1.msra.mxu1 %v4428_v31 }
 0x366   : > { %4442 = vmatmul.mubr.msk.f32.gmra.mxu0 %vm328_vm1, %v6333_v58  ;;  %4452 = vmatmul.mubr.msk.f32.gmra.mxu1 %vm328_vm1, %v6333_v58 }
 0x367   : > { %3324 = vmatprep.mubr.f32.mxu0 %v6295_v24  ;;  %3437 = vmatprep.mubr.f32.mxu1 %v6295_v24 }
 0x36a   : > { %4443 = vmatmul.mubr.msk.f32.gmra.mxu0 %vm328_vm1, %v6334_v1  ;;  %4453 = vmatmul.mubr.msk.f32.gmra.mxu1 %vm328_vm1, %v6334_v1 }
 0x36b   : > { %3330 = vmatprep.mubr.f32.mxu0 %v6295_v24  ;;  %3443 = vmatprep.mubr.f32.mxu1 %v6295_v24 }
 0x36e   : > { %4444 = vmatmul.mubr.msk.f32.gmra.mxu0 %vm328_vm1, %v6335_v51  ;;  %4454 = vmatmul.mubr.msk.f32.gmra.mxu1 %vm328_vm1, %v6335_v51 }
 0x36f   : > { %3336 = vmatprep.mubr.f32.mxu0 %v6295_v24  ;;  %3449 = vmatprep.mubr.f32.mxu1 %v6295_v24 }
 0x372   : > { %4445 = vmatmul.mubr.msk.f32.gmra.mxu0 %vm328_vm1, %v6336_v60  ;;  %4455 = vmatmul.mubr.msk.f32.gmra.mxu1 %vm328_vm1, %v6336_v60 }
 0x373   : > { %3342 = vmatprep.mubr.f32.mxu0 %v6295_v24  ;;  %3455 = vmatprep.mubr.f32.mxu1 %v6295_v24 }
 0x376   : > { %4446 = vmatmul.mubr.msk.f32.gmra.mxu0 %vm328_vm1, %v6337_v15  ;;  %4456 = vmatmul.mubr.msk.f32.gmra.mxu1 %vm328_vm1, %v6337_v15 }
 0x377   : > { %3348 = vmatprep.mubr.f32.mxu0 %v6295_v24  ;;  %3461 = vmatprep.mubr.f32.mxu1 %v6295_v24 }
 0x37a   : > { %4447 = vmatmul.mubr.msk.f32.gmra.mxu0 %vm328_vm1, %v6338_v46  ;;  %4457 = vmatmul.mubr.msk.f32.gmra.mxu1 %vm328_vm1, %v6338_v46 }
 0x37b   : > { %3532 = vmatprep.mubr.f32.mxu0 %v6295_v24  ;;  %3645 = vmatprep.mubr.f32.mxu1 %v6295_v24 }
 0x37e   : > { %4460 = vmatmul.mubr.msk.f32.vlgmr.msra.gmra.mxu0 %vm328_vm1, %v5506_v36  ;;  %4470 = vmatmul.mubr.msk.f32.vlgmr.msra.gmra.mxu1 %vm328_vm1, %v5506_v36 }
 0x37f   : > { %3538 = vmatprep.mubr.f32.mxu0 %v6295_v24  ;;  %3651 = vmatprep.mubr.f32.mxu1 %v6295_v24 }
 0x382   : > { %4461 = vmatmul.mubr.msk.f32.gmra.mxu0 %vm328_vm1, %v5523_v9  ;;  %4471 = vmatmul.mubr.msk.f32.gmra.mxu1 %vm328_vm1, %v5523_v9 }
 0x383   : > { %3544 = vmatprep.mubr.f32.mxu0 %v6295_v24  ;;  %3657 = vmatprep.mubr.f32.mxu1 %v6295_v24 }
 0x386   : > { %4462 = vmatmul.mubr.msk.f32.gmra.mxu0 %vm328_vm1, %v6333_v58  ;;  %4472 = vmatmul.mubr.msk.f32.gmra.mxu1 %vm328_vm1, %v6333_v58 }
 0x387   : > { %3550 = vmatprep.mubr.f32.mxu0 %v6295_v24  ;;  %3663 = vmatprep.mubr.f32.mxu1 %v6295_v24 }
 0x38a   : > { %4463 = vmatmul.mubr.msk.f32.gmra.mxu0 %vm328_vm1, %v6334_v1  ;;  %4473 = vmatmul.mubr.msk.f32.gmra.mxu1 %vm328_vm1, %v6334_v1 }
 0x38b   : > { %3556 = vmatprep.mubr.f32.mxu0 %v6295_v24  ;;  %3669 = vmatprep.mubr.f32.mxu1 %v6295_v24 }
 0x38e   : > { %4464 = vmatmul.mubr.msk.f32.gmra.mxu0 %vm328_vm1, %v6335_v51  ;;  %4474 = vmatmul.mubr.msk.f32.gmra.mxu1 %vm328_vm1, %v6335_v51 }
 0x38f   : > { %3562 = vmatprep.mubr.f32.mxu0 %v6295_v24  ;;  %3675 = vmatprep.mubr.f32.mxu1 %v6295_v24 }
 0x392   : > { %4465 = vmatmul.mubr.msk.f32.gmra.mxu0 %vm328_vm1, %v6336_v60  ;;  %4475 = vmatmul.mubr.msk.f32.gmra.mxu1 %vm328_vm1, %v6336_v60 }
 0x393   : > { %3568 = vmatprep.mubr.f32.mxu0 %v6295_v24  ;;  %3681 = vmatprep.mubr.f32.mxu1 %v6295_v24 }
 0x396   : > { %4466 = vmatmul.mubr.msk.f32.gmra.mxu0 %vm328_vm1, %v6337_v15  ;;  %4476 = vmatmul.mubr.msk.f32.gmra.mxu1 %vm328_vm1, %v6337_v15 }
 0x397   : > { %3574 = vmatprep.mubr.f32.mxu0 %v6295_v24  ;;  %3687 = vmatprep.mubr.f32.mxu1 %v6295_v24 }
 0x39a   : > { %4467 = vmatmul.mubr.msk.f32.gmra.mxu0 %vm328_vm1, %v6338_v46  ;;  %4477 = vmatmul.mubr.msk.f32.gmra.mxu1 %vm328_vm1, %v6338_v46 }
 0x39b   : > { %3886 = vmatprep.mubr.f32.mxu0 %v6295_v24  ;;  %3957 = vmatprep.mubr.f32.mxu1 %v6295_v24 }
 0x3f8   : > { %v2936_v36 = vpop.f32.mrf.mxu0  ;;  %v3007_v9 = vpop.f32.mrf.mxu1 }
 0x3f9   : > { %v2937_v17 = vadd.f32 %v2936_v36, %v6339_v63  ;;  %v3008_v47 = vadd.f32 %v3007_v9, %v6339_v63 }
 0x3fa   : > { %v2938_v55 = vpop.f32.mrf.mxu0  ;;  %v3009_v34 = vpop.f32.mrf.mxu1 }
 0x3fb   : > { %v2939_v57 = vadd.f32 %v2938_v55, %v6339_v63  ;;  %v3010_v41 = vadd.f32 %v3009_v34, %v6339_v63 }
 0x3fd   : > { %v3162_v13 = vcombine.low %v2937_v17, %v2939_v57  ;;  %v3163_v27 = vcombine.low %v3008_v47, %v3010_v41 }
 0x3ff   : > { %v3170_v5 = vrot.slane %v3162_v13, %v6340_v21  ;;  %v3177_v14 = vrot.slane %v3163_v27, %v6340_v21 }
 0x401   : > { %v3178_v61 = vcombine.low %v3170_v5, %v3177_v14 }
 0x403   : > { %4420 = vst [vmem:[%s5280_s7 + $0x20] sm:$0xff] %v3178_v61 }
 0x418   : > { %v3078_v20 = vpop.f32.mrf.mxu0  ;;  %v3149_v12 = vpop.f32.mrf.mxu1 }
 0x419   : > { %v3079_v38 = vadd.f32 %v3078_v20, %v6339_v63  ;;  %v3150_v30 = vadd.f32 %v3149_v12, %v6339_v63 }
 0x41a   : > { %v3080_v16 = vpop.f32.mrf.mxu0  ;;  %v3151_v23 = vpop.f32.mrf.mxu1 }
 0x41b   : > { %v3081_v62 = vadd.f32 %v3080_v16, %v6339_v63  ;;  %v3152_v32 = vadd.f32 %v3151_v23, %v6339_v63 }
 0x41d   : > { %v3179_v4 = vcombine.low %v3079_v38, %v3081_v62  ;;  %v3180_v3 = vcombine.low %v3150_v30, %v3152_v32 }
 0x41e   : > { %v3308_v52 = vpop.f32.mrf.mxu0  ;;  %v3421_v37 = vpop.f32.mrf.mxu1 }
 0x41f   : > { %v3187_v25 = vrot.slane %v3179_v4, %v6340_v21  ;;  %v3194_v2 = vrot.slane %v3180_v3, %v6340_v21  ;;  %v5988_v31 = vadd.f32 %v3308_v52, %v4934_v56  ;;  %v5991_v58 = vadd.f32 %v3421_v37, %v4934_v56 }
 0x420   : > { %v3310_v49 = vpop.f32.mrf.mxu0  ;;  %v3423_v7 = vpop.f32.mrf.mxu1 }
 0x421   : > { %v3195_v54 = vcombine.low %v3187_v25, %v3194_v2  ;;  %v5994_v1 = vadd.f32 %v3310_v49, %v4934_v56  ;;  %v5997_v51 = vadd.f32 %v3423_v7, %v4934_v56 }
 0x422   : > { %v3314_v18 = vpop.f32.mrf.mxu0  ;;  %v3427_v11 = vpop.f32.mrf.mxu1 }
 0x423   : > { %4421 = vst [vmem:[%s5280_s7 + $0x28] sm:$0xff] %v3195_v54  ;;  %v6000_v46 = vadd.f32 %v3314_v18, %v4930_v48  ;;  %v6003_v36 = vadd.f32 %v3427_v11, %v4930_v48 }
 0x424   : > { %v3316_v50 = vpop.f32.mrf.mxu0  ;;  %v3429_v42 = vpop.f32.mrf.mxu1 }
 0x425   : > { %v6006_v9 = vadd.f32 %v3316_v50, %v4930_v48  ;;  %v6009_v55 = vadd.f32 %v3429_v42, %v4930_v48  ;;  %v3702_v62 = vmax.f32 %v6000_v46, 0.0  ;;  %v6344_v46 = vmax.f32 %v5988_v31, 0.0 }
 0x426   : > { %v3320_v26 = vpop.f32.mrf.mxu0  ;;  %v3433_v39 = vpop.f32.mrf.mxu1 }
 0x427   : > { %v6012_v34 = vadd.f32 %v3320_v26, %v4928_v45  ;;  %v6015_v17 = vadd.f32 %v3433_v39, %v4928_v45  ;;  %v3703_v4 = vmax.f32 %v6006_v9, 0.0  ;;  %v3705_v3 = vmax.f32 %v6009_v55, 0.0 }
 0x428   : > { %v3322_v6 = vpop.f32.mrf.mxu0  ;;  %v3435_v43 = vpop.f32.mrf.mxu1 }
 0x429   : > { %v6018_v47 = vadd.f32 %v3322_v6, %v4928_v45  ;;  %v6021_v57 = vadd.f32 %v3435_v43, %v4928_v45  ;;  %v3710_v52 = vmax.f32 %v6012_v34, 0.0  ;;  %v3712_v37 = vmax.f32 %v6015_v17, 0.0 }
 0x42a   : > { %v3326_v8 = vpop.f32.mrf.mxu0  ;;  %v3439_v10 = vpop.f32.mrf.mxu1 }
 0x42b   : > { %v3327_v14 = vadd.f32 %v3326_v8, %v4924_v35  ;;  %v3440_v61 = vadd.f32 %v3439_v10, %v4924_v35  ;;  %v3711_v25 = vmax.f32 %v6018_v47, 0.0  ;;  %v3713_v2 = vmax.f32 %v6021_v57, 0.0 }
 0x42c   : > { %v3328_v44 = vpop.f32.mrf.mxu0  ;;  %v3441_v28 = vpop.f32.mrf.mxu1 }
 0x42d   : > { %v3329_v16 = vadd.f32 %v3328_v44, %v4924_v35  ;;  %v3442_v23 = vadd.f32 %v3441_v28, %v4924_v35  ;;  %v3718_v54 = vmax.f32 %v3327_v14, 0.0  ;;  %v3720_v18 = vmax.f32 %v3440_v61, 0.0 }
 0x42e   : > { %v3332_v59 = vpop.f32.mrf.mxu0  ;;  %v3445_v33 = vpop.f32.mrf.mxu1 }
 0x42f   : > { %v3719_v42 = vmax.f32 %v3329_v16, 0.0  ;;  %v3721_v26 = vmax.f32 %v3442_v23, 0.0  ;;  %v6042_v39 = vadd.f32 %v3332_v59, %v6306_v29  ;;  %v6045_v6 = vadd.f32 %v3445_v33, %v6306_v29 }
 0x430   : > { %v3334_v19 = vpop.f32.mrf.mxu0  ;;  %v3447_v22 = vpop.f32.mrf.mxu1 }
 0x431   : > { %v3335_v10 = vadd.f32 %v3334_v19, %v6306_v29  ;;  %v3448_v44 = vadd.f32 %v3447_v22, %v6306_v29 }
 0x432   : > { %v3338_v60 = vpop.f32.mrf.mxu0  ;;  %v3451_v15 = vpop.f32.mrf.mxu1 }
 0x433   : > { %v3339_v57 = vadd.f32 %v3338_v60, %v6307_v0  ;;  %v3452_v19 = vadd.f32 %v3451_v15, %v6307_v0 }
 0x434   : > { %v3340_v41 = vpop.f32.mrf.mxu0  ;;  %v3453_v13 = vpop.f32.mrf.mxu1 }
 0x435   : > { %v3341_v55 = vadd.f32 %v3340_v41, %v6307_v0  ;;  %v3454_v34 = vadd.f32 %v3453_v13, %v6307_v0 }
 0x436   : > { %v3344_v38 = vpop.f32.mrf.mxu0  ;;  %v3457_v30 = vpop.f32.mrf.mxu1 }
 0x437   : > { %v3345_v28 = vadd.f32 %v3344_v38, %v4932_v53  ;;  %v3458_v9 = vadd.f32 %v3457_v30, %v4932_v53  ;;  %v3727_v30 = vmax.f32 %v3335_v10, 0.0  ;;  %v3737_v60 = vmax.f32 %v3454_v34, 0.0 }
 0x438   : > { %v3346_v49 = vpop.f32.mrf.mxu0  ;;  %v3459_v7 = vpop.f32.mrf.mxu1 }
 0x439   : > { %v3347_v11 = vadd.f32 %v3346_v49, %v4932_v53  ;;  %v3460_v50 = vadd.f32 %v3459_v7, %v4932_v53  ;;  %v3729_v49 = vmax.f32 %v3448_v44, 0.0  ;;  %v3742_v7 = vmax.f32 %v3345_v28, 0.0 }
 0x43a   : > { %v3350_v43 = vpop.f32.mrf.mxu0  ;;  %v3463_v8 = vpop.f32.mrf.mxu1  ;;  %v3726_v28 = vmax.f32 %v6042_v39, 0.0  ;;  %v6342_v39 = vmax.f32 %v5994_v1, 0.0 }
 0x43b   : > { %v3351_v59 = vadd.f32 %v3350_v43, %v4926_v40  ;;  %v3464_v17 = vadd.f32 %v3463_v8, %v4926_v40  ;;  %v3743_v14 = vmax.f32 %v3347_v11, 0.0  ;;  %v3745_v22 = vmax.f32 %v3460_v50, 0.0 }
 0x43c   : > { %v3352_v33 = vpop.f32.mrf.mxu0  ;;  %v3465_v47 = vpop.f32.mrf.mxu1  ;;  %v3744_v43 = vmax.f32 %v3458_v9, 0.0  ;;  %v3735_v8 = vmax.f32 %v3341_v55, 0.0  ;;  %v3728_v9 = vmax.f32 %v6045_v6, 0.0  ;;  %v3774_v55 = vsub.f32 %v3710_v52, %v3742_v7 }
 0x43d   : > { %v3750_v61 = vmax.f32 %v3351_v59, 0.0  ;;  %v3752_v16 = vmax.f32 %v3464_v17, 0.0  ;;  %v3353_v23 = vadd.f32 %v3352_v33, %v4926_v40  ;;  %v3466_v41 = vadd.f32 %v3465_v47, %v4926_v40 }
 0x43e   : > { %v6059_v38 = vpop.f32.mrf.mxu0  ;;  %v6061_v13 = vpop.f32.mrf.mxu1  ;;  %v3734_v59 = vmax.f32 %v3339_v57, 0.0  ;;  %v3736_v17 = vmax.f32 %v3452_v19, 0.0  ;;  %v3775_v27 = vsub.f32 %v3711_v25, %v3743_v14  ;;  %v3777_v12 = vsub.f32 %v3713_v2, %v3745_v22 }
 0x43f   : > { %v3751_v5 = vmax.f32 %v3353_v23, 0.0  ;;  %v3753_v15 = vmax.f32 %v3466_v41, 0.0  ;;  %v3782_v33 = vsub.f32 %v3718_v54, %v3750_v61  ;;  %v3784_v47 = vsub.f32 %v3720_v18, %v3752_v16 }
 0x440   : > { %v6063_v11 = vpop.f32.mrf.mxu0  ;;  %v6065_v50 = vpop.f32.mrf.mxu1  ;;  %v3776_v34 = vsub.f32 %v3712_v37, %v3744_v43  ;;  %v3767_v23 = vsub.f32 %v3703_v4, %v3735_v8  ;;  %v3769_v41 = vsub.f32 %v3705_v3, %v3737_v60  ;;  %v6341_v2 = vmax.f32 %v6003_v36, 0.0 }
 0x441   : > { %v3783_v20 = vsub.f32 %v3719_v42, %v3751_v5  ;;  %v3785_v32 = vsub.f32 %v3721_v26, %v3753_v15  ;;  %v3766_v5 = vsub.f32 %v3702_v62, %v3734_v59  ;;  %v3814_v42 = vand.u32 2147483647, %v3782_v33  ;;  %v6092_v59 = vld [vmem:[%s6246_s3] sm:$0x3] }
 0x442   : > { %v6067_v10 = vpop.f32.mrf.mxu0  ;;  %v6069_v44 = vpop.f32.mrf.mxu1  ;;  %v3768_v18 = vsub.f32 %v6341_v2, %v3736_v17  ;;  %v3816_v26 = vand.u32 2147483647, %v3784_v47  ;;  %v3759_v52 = vsub.f32 %v6342_v39, %v3727_v30  ;;  %v6343_v4 = vmax.f32 %v5997_v51, 0.0 }
 0x443   : > { %v3815_v57 = vand.u32 2147483647, %v3783_v20  ;;  %v3817_v19 = vand.u32 2147483647, %v3785_v32  ;;  %v3807_v20 = vand.u32 2147483647, %v3775_v27  ;;  %v3758_v62 = vsub.f32 %v6344_v46, %v3726_v28 }
 0x444   : > { %v6073_v54 = vpop.f32.mrf.mxu0  ;;  %v6075_v25 = vpop.f32.mrf.mxu1  ;;  %v3761_v3 = vsub.f32 %v6343_v4, %v3729_v49  ;;  %v3809_v32 = vand.u32 2147483647, %v3777_v12  ;;  %v6345_v36 = vmax.f32 %v5991_v58, 0.0  ;;  %v3806_v22 = vand.u32 2147483647, %v3774_v55 }
 0x445   : > { %3846 = vmatprep.subr.mxu0 %v3815_v57  ;;  %3917 = vmatprep.subr.mxu1 %v3817_v19  ;;  %v3808_v61 = vand.u32 2147483647, %v3776_v34  ;;  %v3799_v1 = vand.u32 2147483647, %v3767_v23  ;;  %v3801_v16 = vand.u32 2147483647, %v3769_v41  ;;  %v6106_v55 = vadd.f32 %v6061_v13, %v4934_v56 }
 0x446   : > { %v3546_v37 = vpop.f32.mrf.mxu0  ;;  %v3659_v6 = vpop.f32.mrf.mxu1  ;;  %v3760_v14 = vsub.f32 %v6345_v36, %v3728_v9  ;;  %3847 = vmatpush1.msra.mxu0 %v3814_v42  ;;  %3918 = vmatpush1.msra.mxu1 %v3816_v26  ;;  %v3798_v12 = vand.u32 2147483647, %v3766_v5  ;;  %v3800_v30 = vand.u32 2147483647, %v3768_v18  ;;  %v3791_v49 = vand.u32 2147483647, %v3759_v52 }
 0x447   : > { %3848 = vmatprep.subr.mxu0 %v3807_v20  ;;  %3919 = vmatprep.subr.mxu1 %v3809_v32  ;;  %v3793_v31 = vand.u32 2147483647, %v3761_v3  ;;  %v3790_v43 = vand.u32 2147483647, %v3758_v62  ;;  %v6102_v9 = vadd.f32 %v6059_v38, %v4934_v56  ;;  %v6110_v34 = vadd.f32 %v6063_v11, %v4934_v56 }
 0x448   : > { %v3548_v51 = vpop.f32.mrf.mxu0  ;;  %v3661_v27 = vpop.f32.mrf.mxu1  ;;  %3849 = vmatpush1.msra.mxu0 %v3806_v22  ;;  %3920 = vmatpush1.msra.mxu1 %v3808_v61  ;;  %v3792_v8 = vand.u32 2147483647, %v3760_v14  ;;  %v6114_v23 = vadd.f32 %v6065_v50, %v4934_v56  ;;  %v6118_v57 = vadd.f32 %v6067_v10, %v4930_v48  ;;  %v6122_v38 = vadd.f32 %v6069_v44, %v4930_v48 }
 0x449   : > { %3850 = vmatprep.subr.mxu0 %v3799_v1  ;;  %3921 = vmatprep.subr.mxu1 %v3801_v16  ;;  %v6126_v13 = vadd.f32 %v6073_v54, %v4930_v48  ;;  %v6130_v11 = vadd.f32 %v6075_v25, %v4930_v48  ;;  %v6133_v56 = vadd.f32 %v3546_v37, %v4928_v45  ;;  %v3698_v54 = vmax.f32 %v6102_v9, 0.0 }
 0x44a   : > { %v3552_v58 = vpop.f32.mrf.mxu0  ;;  %v3665_v7 = vpop.f32.mrf.mxu1  ;;  %3851 = vmatpush1.msra.mxu0 %v3798_v12  ;;  %3922 = vmatpush1.msra.mxu1 %v3800_v30  ;;  %v6136_v50 = vadd.f32 %v3659_v6, %v4928_v45  ;;  %v6139_v10 = vadd.f32 %v3548_v51, %v4928_v45  ;;  %v6142_v44 = vadd.f32 %v3661_v27, %v4928_v45  ;;  %v3700_v2 = vmax.f32 %v6106_v55, 0.0 }
 0x44b   : > { %3852 = vmatprep.subr.mxu0 %v3791_v49  ;;  %3923 = vmatprep.subr.mxu1 %v3793_v31  ;;  %v3553_v48 = vadd.f32 %v3552_v58, %v4924_v35  ;;  %v3666_v25 = vadd.f32 %v3665_v7, %v4924_v35  ;;  %v3699_v18 = vmax.f32 %v6110_v34, 0.0  ;;  %v3701_v42 = vmax.f32 %v6114_v23, 0.0 }
 0x44c   : > { %v3554_v60 = vpop.f32.mrf.mxu0  ;;  %v3667_v15 = vpop.f32.mrf.mxu1  ;;  %3853 = vmatpush1.msra.mxu0 %v3790_v43  ;;  %3924 = vmatpush1.msra.mxu1 %v3792_v8  ;;  %v3706_v4 = vmax.f32 %v6118_v57, 0.0  ;;  %v3708_v3 = vmax.f32 %v6122_v38, 0.0  ;;  %v3707_v20 = vmax.f32 %v6126_v13, 0.0  ;;  %v3709_v32 = vmax.f32 %v6130_v11, 0.0 }
 0x44d   : > { %4478 = vmatmul.mubr.msk.f32.vlgmr.msra.gmra.mxu0 %vm963_vm2, %v6092_v59  ;;  %4479 = vmatmul.mubr.msk.f32.vlgmr.msra.gmra.mxu1 %vm963_vm2, %v6092_v59  ;;  %v3555_v26 = vadd.f32 %v3554_v60, %v4924_v35  ;;  %v3668_v39 = vadd.f32 %v3667_v15, %v4924_v35  ;;  %v3714_v37 = vmax.f32 %v6133_v56, 0.0  ;;  %v3716_v6 = vmax.f32 %v6136_v50, 0.0 }
 0x44e   : > { %v3558_v17 = vpop.f32.mrf.mxu0  ;;  %v3671_v33 = vpop.f32.mrf.mxu1  ;;  %4028 = vmatprep.mubr.f32.mxu0 %v6295_v24  ;;  %4099 = vmatprep.mubr.f32.mxu1 %v6295_v24  ;;  %v3715_v46 = vmax.f32 %v6139_v10, 0.0  ;;  %v3717_v62 = vmax.f32 %v6142_v44, 0.0  ;;  %v3722_v14 = vmax.f32 %v3553_v48, 0.0  ;;  %v3724_v22 = vmax.f32 %v3666_v25, 0.0 }
 0x44f   : > { %v3723_v16 = vmax.f32 %v3555_v26, 0.0  ;;  %v3725_v51 = vmax.f32 %v3668_v39, 0.0  ;;  %v3559_v27 = vadd.f32 %v3558_v17, %v6306_v29  ;;  %v3672_v12 = vadd.f32 %v3671_v33, %v6306_v29 }
 0x450   : > { %v3560_v47 = vpop.f32.mrf.mxu0  ;;  %v3673_v28 = vpop.f32.mrf.mxu1 }
 0x451   : > { %v3561_v31 = vadd.f32 %v3560_v47, %v6306_v29  ;;  %v3674_v58 = vadd.f32 %v3673_v28, %v6306_v29 }
 0x452   : > { %v3564_v41 = vpop.f32.mrf.mxu0  ;;  %v3677_v24 = vpop.f32.mrf.mxu1 }
 0x453   : > { %v3565_v38 = vadd.f32 %v3564_v41, %v6307_v0  ;;  %v3678_v47 = vadd.f32 %v3677_v24, %v6307_v0  ;;  %v3731_v50 = vmax.f32 %v3561_v31, 0.0  ;;  %v3733_v10 = vmax.f32 %v3674_v58, 0.0 }
 0x454   : > { %v3566_v19 = vpop.f32.mrf.mxu0  ;;  %v3679_v5 = vpop.f32.mrf.mxu1 }
 0x455   : > { %v3567_v8 = vadd.f32 %v3566_v19, %v6307_v0  ;;  %v3680_v60 = vadd.f32 %v3679_v5, %v6307_v0  ;;  %v3738_v39 = vmax.f32 %v3565_v38, 0.0  ;;  %v3740_v41 = vmax.f32 %v3678_v47, 0.0 }
 0x456   : > { %v3570_v45 = vpop.f32.mrf.mxu0  ;;  %v3683_v52 = vpop.f32.mrf.mxu1 }
 0x457   : > { %v3571_v7 = vadd.f32 %v3570_v45, %v4932_v53  ;;  %v3684_v43 = vadd.f32 %v3683_v52, %v4932_v53  ;;  %v3739_v5 = vmax.f32 %v3567_v8, 0.0  ;;  %v3741_v48 = vmax.f32 %v3680_v60, 0.0 }
 0x458   : > { %v3572_v36 = vpop.f32.mrf.mxu0  ;;  %v3685_v35 = vpop.f32.mrf.mxu1  ;;  %v3772_v8 = vsub.f32 %v3708_v3, %v3740_v41 }
 0x459   : > { %v3573_v61 = vadd.f32 %v3572_v36, %v4932_v53  ;;  %v3686_v1 = vadd.f32 %v3685_v35, %v4932_v53  ;;  %v3746_v44 = vmax.f32 %v3571_v7, 0.0  ;;  %v3748_v19 = vmax.f32 %v3684_v43, 0.0 }
 0x45a   : > { %v3576_v30 = vpop.f32.mrf.mxu0  ;;  %v3689_v49 = vpop.f32.mrf.mxu1  ;;  %v3773_v31 = vsub.f32 %v3709_v32, %v3741_v48  ;;  %v3770_v43 = vsub.f32 %v3706_v4, %v3738_v39 }
 0x45b   : > { %v3577_v15 = vadd.f32 %v3576_v30, %v4926_v40  ;;  %v3690_v17 = vadd.f32 %v3689_v49, %v4926_v40  ;;  %v3747_v13 = vmax.f32 %v3573_v61, 0.0  ;;  %v3749_v29 = vmax.f32 %v3686_v1, 0.0 }
 0x45c   : > { %v3578_v57 = vpop.f32.mrf.mxu0  ;;  %v3691_v33 = vpop.f32.mrf.mxu1  ;;  %v3730_v61 = vmax.f32 %v3559_v27, 0.0  ;;  %v3732_v1 = vmax.f32 %v3672_v12, 0.0  ;;  %v3778_v30 = vsub.f32 %v3714_v37, %v3746_v44  ;;  %v3771_v49 = vsub.f32 %v3707_v20, %v3739_v5 }
 0x45d   : > { %v3754_v28 = vmax.f32 %v3577_v15, 0.0  ;;  %v3756_v11 = vmax.f32 %v3690_v17, 0.0  ;;  %v3579_v53 = vadd.f32 %v3578_v57, %v4926_v40  ;;  %v3692_v56 = vadd.f32 %v3691_v33, %v4926_v40 }
 0x45e   : > { %v3779_v24 = vsub.f32 %v3715_v46, %v3747_v13  ;;  %v3781_v52 = vsub.f32 %v3717_v62, %v3749_v29  ;;  %v3780_v40 = vsub.f32 %v3716_v6, %v3748_v19  ;;  %v3765_v46 = vsub.f32 %v3701_v42, %v3733_v10 }
 0x45f   : > { %v3755_v25 = vmax.f32 %v3579_v53, 0.0  ;;  %v3757_v26 = vmax.f32 %v3692_v56, 0.0  ;;  %v3786_v45 = vsub.f32 %v3722_v14, %v3754_v28  ;;  %v3788_v0 = vsub.f32 %v3724_v22, %v3756_v11 }
 0x460   : > { %v3763_v14 = vsub.f32 %v3699_v18, %v3731_v50  ;;  %v3811_v62 = vand.u32 2147483647, %v3779_v24  ;;  %v3813_v22 = vand.u32 2147483647, %v3781_v52  ;;  %v3762_v20 = vsub.f32 %v3698_v54, %v3730_v61 }
 0x461   : > { %v3787_v36 = vsub.f32 %v3723_v16, %v3755_v25  ;;  %v3789_v35 = vsub.f32 %v3725_v51, %v3757_v26  ;;  %v3818_v60 = vand.u32 2147483647, %v3786_v45  ;;  %v3820_v15 = vand.u32 2147483647, %v3788_v0 }
 0x462   : > { %v3764_v32 = vsub.f32 %v3700_v2, %v3732_v1  ;;  %v3810_v4 = vand.u32 2147483647, %v3778_v30  ;;  %v3812_v3 = vand.u32 2147483647, %v3780_v40  ;;  %v3803_v37 = vand.u32 2147483647, %v3771_v49 }
 0x463   : > { %v3819_v58 = vand.u32 2147483647, %v3787_v36  ;;  %v3821_v7 = vand.u32 2147483647, %v3789_v35  ;;  %v3805_v34 = vand.u32 2147483647, %v3773_v31 }
 0x464   : > { %v3802_v23 = vand.u32 2147483647, %v3770_v43  ;;  %v3804_v18 = vand.u32 2147483647, %v3772_v8  ;;  %v3795_v42 = vand.u32 2147483647, %v3763_v14 }
 0x465   : > { %3988 = vmatprep.subr.mxu0 %v3819_v58  ;;  %4059 = vmatprep.subr.mxu1 %v3821_v7  ;;  %v3797_v6 = vand.u32 2147483647, %v3765_v46  ;;  %v3794_v9 = vand.u32 2147483647, %v3762_v20  ;;  %v3796_v54 = vand.u32 2147483647, %v3764_v32 }
 0x466   : > { %3989 = vmatpush1.msra.mxu0 %v3818_v60  ;;  %4060 = vmatpush1.msra.mxu1 %v3820_v15 }
 0x467   : > { %3990 = vmatprep.subr.mxu0 %v3811_v62  ;;  %4061 = vmatprep.subr.mxu1 %v3813_v22 }
 0x468   : > { %3991 = vmatpush1.msra.mxu0 %v3810_v4  ;;  %4062 = vmatpush1.msra.mxu1 %v3812_v3 }
 0x469   : > { %3992 = vmatprep.subr.mxu0 %v3803_v37  ;;  %4063 = vmatprep.subr.mxu1 %v3805_v34 }
 0x46a   : > { %3993 = vmatpush1.msra.mxu0 %v3802_v23  ;;  %4064 = vmatpush1.msra.mxu1 %v3804_v18 }
 0x46b   : > { %3994 = vmatprep.subr.mxu0 %v3795_v42  ;;  %4065 = vmatprep.subr.mxu1 %v3797_v6 }
 0x46c   : > { %3995 = vmatpush1.msra.mxu0 %v3794_v9  ;;  %4066 = vmatpush1.msra.mxu1 %v3796_v54 }
 0x46d   : > { %4480 = vmatmul.mubr.msk.f32.vlgmr.msra.gmra.mxu0 %vm963_vm2, %v6092_v59  ;;  %4481 = vmatmul.mubr.msk.f32.vlgmr.msra.gmra.mxu1 %vm963_vm2, %v6092_v59 }
 0x50d   : > { %v3888_v55 = vpop.f32.mrf.mxu0  ;;  %v3959_v2 = vpop.f32.mrf.mxu1 }
 0x50e   : > { %v3889_v27 = vadd.f32 %v3888_v55, %v6339_v63  ;;  %v3960_v12 = vadd.f32 %v3959_v2, %v6339_v63 }
 0x50f   : > { %v3890_v16 = vpop.f32.mrf.mxu0  ;;  %v3961_v51 = vpop.f32.mrf.mxu1 }
 0x510   : > { %v3891_v17 = vadd.f32 %v3890_v16, %v6339_v63  ;;  %v3962_v57 = vadd.f32 %v3961_v51, %v6339_v63 }
 0x512   : > { %v4114_v33 = vcombine.low %v3889_v27, %v3891_v17  ;;  %v4115_v38 = vcombine.low %v3960_v12, %v3962_v57 }
 0x514   : > { %v4122_v47 = vrot.slane %v4114_v33, %v6340_v21  ;;  %v4129_v59 = vrot.slane %v4115_v38, %v6340_v21 }
 0x516   : > { %v4130_v13 = vcombine.low %v4122_v47, %v4129_v59 }
 0x518   : > { %4482 = vst [vmem:[%s5280_s7 + $0x30] sm:$0xff] %v4130_v13 }
 0x52d   : > { %v4030_v29 = vpop.f32.mrf.mxu0  ;;  %v4101_v28 = vpop.f32.mrf.mxu1 }
 0x52e   : > { %v4031_v56 = vadd.f32 %v4030_v29, %v6339_v63  ;;  %v4102_v50 = vadd.f32 %v4101_v28, %v6339_v63 }
 0x52f   : > { %v4032_v11 = vpop.f32.mrf.mxu0  ;;  %v4103_v53 = vpop.f32.mrf.mxu1 }
 0x530   : > { %v4033_v10 = vadd.f32 %v4032_v11, %v6339_v63  ;;  %v4104_v44 = vadd.f32 %v4103_v53, %v6339_v63 }
 0x532   : > { %v4131_v19 = vcombine.low %v4031_v56, %v4033_v10  ;;  %v4132_v5 = vcombine.low %v4102_v50, %v4104_v44 }
 0x534   : > { %v4139_v48 = vrot.slane %v4131_v19, %v6340_v21  ;;  %v4146_v25 = vrot.slane %v4132_v5, %v6340_v21 }
 0x536   : > { %v4147_v26 = vcombine.low %v4139_v48, %v4146_v25 }
 0x538   : > { %4483 = vst [vmem:[%s5280_s7 + $0x38] sm:$0xff] %v4147_v26 }
 0x539   : > { %4574 = shalt.err (!%p4571_p5)
}
 0x53a   : > { %s4575_s12 = scalar_lea.hbm %s4168_s29, 1024  ;;  %s4579_s13 = scalar_lea.hbm %s6248_s5, 2048 }
 0x53b   : > { %p4576_p6 = scmp.ne.s32.totalorder %s4168_s29, %s4575_s12  ;;  %p4580_p10 = scmp.lt.s32.totalorder %s4168_s29, %s6248_s5 }
 0x53c   : > { %p4581_p11 = scmp.lt.s32.totalorder %s4579_s13, %s4575_s12 }
 0x53d   : > { %p4577_p7 = pnand %p4576_p6, %p4713_p4 }
 0x53e   : > { %p4582_p12 = por %p4581_p11, %p4580_p10 }
 0x53f   : > { %p4578_p9 = pneg %p4577_p7 }
 0x541   : > { %p4583_p13 = pnand %p4582_p12, %p4578_p9 }
 0x543   : > { %4586 = shalt.err (!%p4583_p13)
}
 0x544   : > { %4491 = dma.vmem_to_hbm [thread:$0]  (%p4713_p4), %s4171_s17, 1024, %s4168_s29, %s4154_s8  }
 0x545 PF: > { %p4497_p0 = scmp.ge.s32.totalorder %s4637_s23, 2  ;;  %s4182_s16 = sand.u32 1, %s4617_s18  }
 0x546   : > { %s4183_s24 = scalar_lea.sflag [#allocation3], %s4182_s16 }
 0x547   : > { %p4494_p1 = pnand %p4497_p0, %p4720_p8 }
 0x549   : > { %p4495_p2 = pneg %p4494_p1 }
 0x54b   : > { %4612 = dma.done.wait (%p4495_p2), %s4183_s24, 1024  }
 0x54c   : > { %4614 = vsyncadd (%p4495_p2), %s4183_s24, 4294966272  ;;  %s18_s23 = sadd.s32 1, %s4637_s23   ;;  %s6346_s18 = smov %s4621_s19 }
 0x54d   : > { %p15_p3 = scmp.ge.s32.totalorder %s18_s23, 4   ;;  %s6347_s19 = smov %s4625_s20 }
 0x54e   : > { %s6348_s20 = smov %s4726_s6  ;;  %s6349_s21 = smov %s4633_s22 }
 0x54f   : > { %s6350_s22 = smov %s6352_s26  ;;  %17 = sbr.rel (!%p15_p3) target bundleno = 4 (0x4), region = 81 }
 0x554   :  { %4188 = vsyncpa [#allocation3], 1 }
 0x555   :  { %4190 = vsyncpa [#allocation3 + $0x1], 1 }

</bundles_post_ra>
